<compile_context>
chip_gen: v7x
topology: tpu7x:2x2x1
jax: 0.10.0
libtpu: 0.0.40
codegen_flags: <defaults>
</compile_context>

<pallas_src>
import functools
import math

import jax
import jax.numpy as jnp
from jax.experimental import pallas as pl
from jax.experimental.pallas import tpu as pltpu

_LANE = 128
_SUBLANE = 8
_T_SUB = 8          # wavefront sub-chunk length (timesteps)


def _round_up(x, m):
    return (x + m - 1) // m * m


def _nbytes(shape, dtype):
    return math.prod(shape) * jnp.dtype(dtype).itemsize


def _num_tensorcores():
    """Best-effort TensorCore count per chip (2 on v7x, else 1)."""
    try:
        kind = (getattr(jax.devices()[0], "device_kind", "") or "").lower()
        if "v7" in kind:
            return 2
    except Exception:
        pass
    return 1


def _vmem_capacity_bytes():
    try:
        return int(pltpu.get_tpu_info().vmem_capacity_bytes)
    except Exception:
        return 64 * 1024 * 1024       # conservative default (v7x)


# ---------------------------------------------------------------------------
# Fused 3-layer wavefront LSTM kernel
# ---------------------------------------------------------------------------
def _encoder_kernel(
    gx1_ref,                                   # (t_chunk, bb, 4*hp1) f32  (x-proj, hoisted)
    whh1_ref,                                  # (hp1, 4*hp1) bf16
    wih2_ref, whh2_ref, b2_ref,                # (hp1, 4*ep) bf16, (ep, 4*ep) bf16, (1, 4*ep) f32
    wih3_ref, whh3_ref, b3_ref,                # (ep, 4*ep) bf16 x2, (1, 4*ep) f32
    y_ref,                                     # (t_chunk, bb, ep) f32
    h1_ref, c1_ref, h2_ref, c2_ref, h3_ref, c3_ref,   # carried recurrent state
    seq1_ref, gx2_ref, seq2_ref, gx3_ref,              # sub-chunk work buffers
    *, hp1, ep, t_chunk, t_sub,
):
    bb = y_ref.shape[1]
    n_sub = t_chunk // t_sub

    # Zero the recurrent state at the first time-chunk of every batch block.
    @pl.when(pl.program_id(1) == 0)
    def _():
        for r in (h1_ref, c1_ref, h2_ref, c2_ref, h3_ref, c3_ref):
            r[...] = jnp.zeros_like(r)

    # Load carried state into registers once per chunk (off the serial path).
    h1, c1 = h1_ref[...], c1_ref[...]
    h2, c2 = h2_ref[...], c2_ref[...]
    h3, c3 = h3_ref[...], c3_ref[...]

    def cell(gates, c, h_dim):
        # Gate blocks are lane-aligned (h_dim is a multiple of 128).
        i_g = jax.nn.sigmoid(gates[:, 0 * h_dim:1 * h_dim])
        f_g = jax.nn.sigmoid(gates[:, 1 * h_dim:2 * h_dim])
        g_g = jnp.tanh(gates[:, 2 * h_dim:3 * h_dim])
        o_g = jax.nn.sigmoid(gates[:, 3 * h_dim:4 * h_dim])
        c_new = f_g * c + i_g * g_g
        h_new = o_g * jnp.tanh(c_new)
        return h_new, c_new

    # Wavefront over sub-chunks: iteration w runs layer-1 on sub-chunk w,
    # layer-2 on w-1 and layer-3 on w-2.  Within one iteration the three
    # per-step chains are mutually independent -> ILP across layers.
    for w in range(n_sub + 2):
        do1 = w < n_sub
        do2 = 1 <= w <= n_sub
        do3 = 2 <= w <= n_sub + 1

        # Hoisted per-sub-chunk input projections (lane-dense matmuls).
        # They consume seq1/seq2 (written in iteration w-1) BEFORE the step
        # loop below overwrites those single buffers (WAR kept by program order).
        if do2:
            gx2_ref[...] = jnp.dot(
                seq1_ref[...].astype(jnp.bfloat16), wih2_ref[...],
                preferred_element_type=jnp.float32) + b2_ref[...]
        if do3:
            gx3_ref[...] = jnp.dot(
                seq2_ref[...].astype(jnp.bfloat16), wih3_ref[...],
                preferred_element_type=jnp.float32) + b3_ref[...]

        base1 = w * t_sub
        base3 = (w - 2) * t_sub

        # TODO(synk): optionally split W_hh into 4 per-gate (H,H) matmuls so
        # sigmoid(i) overlaps remaining MXU output (verify with bundle dump).
        def step(t, carry, do1=do1, do2=do2, do3=do3, base1=base1, base3=base3):
            h1, c1, h2, c2, h3, c3 = carry
            off = pl.multiple_of(t * bb, _SUBLANE)
            if do1:
                g1 = gx1_ref[base1 + t] + jnp.dot(
                    h1.astype(jnp.bfloat16), whh1_ref[...],
                    preferred_element_type=jnp.float32)
                h1, c1 = cell(g1, c1, hp1)
                seq1_ref[pl.ds(off, bb), :] = h1
            if do2:
                g2 = gx2_ref[pl.ds(off, bb), :] + jnp.dot(
                    h2.astype(jnp.bfloat16), whh2_ref[...],
                    preferred_element_type=jnp.float32)
                h2, c2 = cell(g2, c2, ep)
                seq2_ref[pl.ds(off, bb), :] = h2
            if do3:
                g3 = gx3_ref[pl.ds(off, bb), :] + jnp.dot(
                    h3.astype(jnp.bfloat16), whh3_ref[...],
                    preferred_element_type=jnp.float32)
                h3, c3 = cell(g3, c3, ep)
                y_ref[base3 + t] = h3.astype(y_ref.dtype)
            return (h1, c1, h2, c2, h3, c3)

        h1, c1, h2, c2, h3, c3 = jax.lax.fori_loop(
            0, t_sub, step, (h1, c1, h2, c2, h3, c3))

    # Persist recurrent state for the next time-chunk.
    h1_ref[...], c1_ref[...] = h1, c1
    h2_ref[...], c2_ref[...] = h2, c2
    h3_ref[...], c3_ref[...] = h3, c3


# ---------------------------------------------------------------------------
# Wrapper
# ---------------------------------------------------------------------------
def encoder_forward(x, packed, embedding_dim):
    """x: (B, T, F) batch-first (like PyTorch).  Returns (B, T, embedding_dim)."""
    (wih1_t, whh1_t, b1), (wih2_t, whh2_t, b2), (wih3_t, whh3_t, b3) = packed
    hp1 = whh1_t.shape[0]            # padded hidden_dim (multiple of 128)
    ep = whh2_t.shape[0]             # padded embedding_dim (multiple of 128)
    B, T, F = x.shape
    t_sub = _T_SUB

    # ---- batch blocking: split only when the chip really has 2 TCs (v7x) ----
    num_tc = _num_tensorcores()
    Bp = _round_up(B, _SUBLANE)
    if num_tc > 1 and Bp >= _SUBLANE * num_tc:
        Bp = _round_up(Bp, _SUBLANE * num_tc)
        bb = Bp // num_tc
    else:
        bb = Bp
    n_bblocks = Bp // bb

    # ---- VMEM-budget-derived time chunking + VMEM limit ----
    vmem_cap = _vmem_capacity_bytes()
    weight_bytes = 2 * (                                  # Pallas double-buffers inputs
        _nbytes(whh1_t.shape, whh1_t.dtype) + _nbytes(wih2_t.shape, wih2_t.dtype)
        + _nbytes(whh2_t.shape, whh2_t.dtype) + _nbytes(b2.shape, b2.dtype)
        + _nbytes(wih3_t.shape, wih3_t.dtype) + _nbytes(whh3_t.shape, whh3_t.dtype)
        + _nbytes(b3.shape, b3.dtype))
    state_bytes = 4 * bb * (2 * hp1 + 4 * ep)
    sub_bytes = 4 * t_sub * bb * (hp1 + ep + 8 * ep)      # seq1 + seq2 + gx2 + gx3
    per_step_bytes = 2 * 4 * bb * (4 * hp1 + ep)          # gx1-in + y-out, double-buffered
    fixed_bytes = weight_bytes + state_bytes + sub_bytes
    budget = int(0.6 * vmem_cap)
    t_chunk_max = max(t_sub, min(128, (budget - fixed_bytes) // per_step_bytes))

    # Keep the chunk count, then shrink the chunk to minimise dead padded steps.
    n_chunks = -(-T // t_chunk_max)
    t_chunk = _round_up(-(-T // n_chunks), t_sub)
    Tp = n_chunks * t_chunk

    need = fixed_bytes + per_step_bytes * t_chunk
    vmem_limit = int(min(vmem_cap, max(32 << 20, need * 3 // 2 + (8 << 20))))

    # ---- layer-1 input projection hoisted to XLA: lane-dense kernel input ----
    x_tm = jnp.transpose(x.astype(jnp.float32), (1, 0, 2))               # (T, B, F)
    gx1 = jnp.einsum("tbf,fg->tbg", x_tm, wih1_t,
                     precision=jax.lax.Precision.HIGHEST) + b1           # (T, B, 4*hp1)
    gx1 = jnp.pad(gx1, ((0, Tp - T), (0, Bp - B), (0, 0)))

    kernel = functools.partial(_encoder_kernel, hp1=hp1, ep=ep,
                               t_chunk=t_chunk, t_sub=t_sub)

    def const_spec(a):
        nd = a.ndim
        # Constant index map: DMA'd once, VMEM-resident for the whole grid.
        # TODO(synk): pipeline_mode=pl.Buffered(1) would drop the unused second
        # weight buffer; left at the default for portability.
        return pl.BlockSpec(a.shape, lambda b, i, _nd=nd: (0,) * _nd)

    if num_tc > 1 and n_bblocks == num_tc and hasattr(pltpu, "CORE_PARALLEL"):
        dim_sem = (pltpu.CORE_PARALLEL, pltpu.ARBITRARY)   # shard batch across TCs
    else:
        dim_sem = ("parallel", "arbitrary")

    grid_spec = pltpu.PrefetchScalarGridSpec(
        num_scalar_prefetch=0,
        grid=(n_bblocks, n_chunks),
        in_specs=[
            pl.BlockSpec((t_chunk, bb, 4 * hp1), lambda b, i: (i, b, 0)),
            const_spec(whh1_t),
            const_spec(wih2_t), const_spec(whh2_t), const_spec(b2),
            const_spec(wih3_t), const_spec(whh3_t), const_spec(b3),
        ],
        out_specs=pl.BlockSpec((t_chunk, bb, ep), lambda b, i: (i, b, 0)),
        scratch_shapes=[
            pltpu.VMEM((bb, hp1), jnp.float32),             # h1
            pltpu.VMEM((bb, hp1), jnp.float32),             # c1
            pltpu.VMEM((bb, ep), jnp.float32),              # h2
            pltpu.VMEM((bb, ep), jnp.float32),              # c2
            pltpu.VMEM((bb, ep), jnp.float32),              # h3
            pltpu.VMEM((bb, ep), jnp.float32),              # c3
            pltpu.VMEM((t_sub * bb, hp1), jnp.float32),     # seq1 (one sub-chunk)
            pltpu.VMEM((t_sub * bb, 4 * ep), jnp.float32),  # gx2
            pltpu.VMEM((t_sub * bb, ep), jnp.float32),      # seq2
            pltpu.VMEM((t_sub * bb, 4 * ep), jnp.float32),  # gx3
        ],
    )

    out = pl.pallas_call(
        kernel,
        out_shape=jax.ShapeDtypeStruct((Tp, Bp, ep), jnp.float32),
        grid_spec=grid_spec,
        compiler_params=pltpu.CompilerParams(
            dimension_semantics=dim_sem,
            vmem_limit_bytes=vmem_limit,
        ),
    )(gx1, whh1_t, wih2_t, whh2_t, b2, wih3_t, whh3_t, b3)

    out = out[:T, :B, :embedding_dim]       # drop time / batch / lane padding
    return jnp.transpose(out, (1, 0, 2))    # -> (B, T, E)


# ---------------------------------------------------------------------------
# Parameter init (PyTorch-style), packing, and Encoder module
# ---------------------------------------------------------------------------
def _init_lstm_params(key, input_size, hidden_size):
    """Deterministic PyTorch-style init: U(-1/sqrt(H), 1/sqrt(H))."""
    k = 1.0 / (hidden_size ** 0.5)
    ks = jax.random.split(key, 4)
    w_ih = jax.random.uniform(ks[0], (4 * hidden_size, input_size), jnp.float32, -k, k)
    w_hh = jax.random.uniform(ks[1], (4 * hidden_size, hidden_size), jnp.float32, -k, k)
    b_ih = jax.random.uniform(ks[2], (4 * hidden_size,), jnp.float32, -k, k)
    b_hh = jax.random.uniform(ks[3], (4 * hidden_size,), jnp.float32, -k, k)
    return (w_ih, w_hh, b_ih, b_hh)


def _pad_gate_cols(w, h, hp):
    """Zero-pad each of the 4 stacked gate blocks along the last dim h -> hp.

    Padded gate columns have zero weights and zero bias, so the padded h/c
    lanes stay exactly 0 through the recurrence and never leak into real lanes.
    """
    if h == hp:
        return w
    pad = ((0, 0),) * (w.ndim - 1) + ((0, hp - h),)
    return jnp.concatenate(
        [jnp.pad(w[..., k * h:(k + 1) * h], pad) for k in range(4)], axis=-1)


def _pack_layer(params, in_padded, hp, wih_dtype):
    """PyTorch layout -> transposed, lane-padded, pre-summed-bias kernel layout."""
    w_ih, w_hh, b_ih, b_hh = params
    h = w_hh.shape[1]
    wih_t = _pad_gate_cols(jnp.transpose(w_ih), h, hp)                       # (In,  4*hp)
    wih_t = jnp.pad(wih_t, ((0, in_padded - wih_t.shape[0]), (0, 0))).astype(wih_dtype)
    whh_t = _pad_gate_cols(jnp.transpose(w_hh), h, hp)                       # (h,   4*hp)
    whh_t = jnp.pad(whh_t, ((0, hp - h), (0, 0))).astype(jnp.bfloat16)
    bias = _pad_gate_cols((b_ih + b_hh)[None, :], h, hp).astype(jnp.float32)  # (1, 4*hp)
    return wih_t, whh_t, bias


class Encoder:
    """JAX/Pallas equivalent of the PyTorch Encoder module (eval-mode forward)."""

    def __init__(self, seq_len, n_features, embedding_dim=128, key=None):
        self.seq_len = seq_len
        self.n_features = n_features
        self.embedding_dim = embedding_dim
        self.hidden_dim = 2 * embedding_dim
        if key is None:
            key = jax.random.PRNGKey(0)
        k1, k2, k3 = jax.random.split(key, 3)
        # Raw f32 params in PyTorch layout (kept for the reference check).
        self.raw = [
            _init_lstm_params(k1, n_features, self.hidden_dim),      # lstm1.l0
            _init_lstm_params(k2, self.hidden_dim, embedding_dim),   # lstm2.l0
            _init_lstm_params(k3, embedding_dim, embedding_dim),     # lstm2.l1
        ]
        hp1 = _round_up(self.hidden_dim, _LANE)
        ep = _round_up(embedding_dim, _LANE)
        self.packed = (
            # layer-1 W_ih stays f32: its x-projection runs in the XLA wrapper.
            _pack_layer(self.raw[0], n_features, hp1, jnp.float32),
            _pack_layer(self.raw[1], hp1, ep, jnp.bfloat16),
            _pack_layer(self.raw[2], ep, ep, jnp.bfloat16),
        )

    def __call__(self, x):
        # TODO(synk): nn.LSTM inter-layer dropout (p=0.5) is train-mode only;
        # eval-mode forward semantics are reproduced (no dropout).
        return encoder_forward(x, self.packed, self.embedding_dim)


# ---------------------------------------------------------------------------
# Pure-JAX reference (f32) for correctness verification
# ---------------------------------------------------------------------------
def _lstm_ref(x_tm, p):
    w_ih, w_hh, b_ih, b_hh = p
    H = w_hh.shape[1]
    B = x_tm.shape[1]

    def step(carry, x_t):
        h, c = carry
        gates = x_t @ w_ih.T + h @ w_hh.T + b_ih + b_hh
        i = jax.nn.sigmoid(gates[:, 0 * H:1 * H])
        f = jax.nn.sigmoid(gates[:, 1 * H:2 * H])
        g = jnp.tanh(gates[:, 2 * H:3 * H])
        o = jax.nn.sigmoid(gates[:, 3 * H:4 * H])
        c = f * c + i * g
        h = o * jnp.tanh(c)
        return (h, c), h

    h0 = jnp.zeros((B, H), jnp.float32)
    _, ys = jax.lax.scan(step, (h0, h0), x_tm)
    return ys


def encoder_reference(x, raw_params):
    x_tm = jnp.transpose(x, (1, 0, 2))
    for p in raw_params:
        x_tm = _lstm_ref(x_tm, p)
    return jnp.transpose(x_tm, (1, 0, 2))


if __name__ == "__main__":
    batch, seq_len, n_features, embedding_dim = 2, 8, 4, 32

    key = jax.random.PRNGKey(0)
    k_params, k_x = jax.random.split(key)

    enc = Encoder(seq_len, n_features, embedding_dim, key=k_params)
    x = jax.random.normal(k_x, (batch, seq_len, n_features), dtype=jnp.float32)

    out = jax.block_until_ready(enc(x))
    assert out.shape == (batch, seq_len, embedding_dim), out.shape
    assert bool(jnp.all(jnp.isfinite(out)))

    ref = jax.block_until_ready(encoder_reference(x, enc.raw))
    max_err = float(jnp.max(jnp.abs(out - ref)))
    assert max_err < 5e-2, f"max abs error vs reference: {max_err}"

    print("KERNEL_OK")
</pallas_src>

<mosaic_0001>
module attributes {stable_mosaic.version = 11 : i64} {
  func.func @_encoder_kernel(%arg0: i32, %arg1: i32, %arg2: memref<8x8x512xf32, #tpu.memory_space<vmem>>, %arg3: memref<128x512xbf16, #tpu.memory_space<vmem>>, %arg4: memref<128x512xbf16, #tpu.memory_space<vmem>>, %arg5: memref<128x512xbf16, #tpu.memory_space<vmem>>, %arg6: memref<1x512xf32, #tpu.memory_space<vmem>>, %arg7: memref<128x512xbf16, #tpu.memory_space<vmem>>, %arg8: memref<128x512xbf16, #tpu.memory_space<vmem>>, %arg9: memref<1x512xf32, #tpu.memory_space<vmem>>, %arg10: memref<8x8x128xf32, #tpu.memory_space<vmem>>, %arg11: memref<8x128xf32, #tpu.memory_space<vmem>>, %arg12: memref<8x128xf32, #tpu.memory_space<vmem>>, %arg13: memref<8x128xf32, #tpu.memory_space<vmem>>, %arg14: memref<8x128xf32, #tpu.memory_space<vmem>>, %arg15: memref<8x128xf32, #tpu.memory_space<vmem>>, %arg16: memref<8x128xf32, #tpu.memory_space<vmem>>, %arg17: memref<64x128xf32, #tpu.memory_space<vmem>>, %arg18: memref<64x512xf32, #tpu.memory_space<vmem>>, %arg19: memref<64x128xf32, #tpu.memory_space<vmem>>, %arg20: memref<64x512xf32, #tpu.memory_space<vmem>>) attributes {dimension_semantics = [#tpu.dimension_semantics<parallel>, #tpu.dimension_semantics<arbitrary>], iteration_bounds = array<i64: 1, 1>, scalar_prefetch = 0 : i64, scratch_operands = 10 : i64, tpu.core_type = #tpu.core_type<tc>, window_params = [{transform_indices = @transform_0, window_bounds = array<i64: 8, 8, 512>}, {pipeline_mode = #tpu.pipeline_mode<synchronous>, transform_indices = @transform_1, window_bounds = array<i64: 128, 512>}, {pipeline_mode = #tpu.pipeline_mode<synchronous>, transform_indices = @transform_2, window_bounds = array<i64: 128, 512>}, {pipeline_mode = #tpu.pipeline_mode<synchronous>, transform_indices = @transform_3, window_bounds = array<i64: 128, 512>}, {pipeline_mode = #tpu.pipeline_mode<synchronous>, transform_indices = @transform_4, window_bounds = array<i64: 1, 512>}, {pipeline_mode = #tpu.pipeline_mode<synchronous>, transform_indices = @transform_5, window_bounds = array<i64: 128, 512>}, {pipeline_mode = #tpu.pipeline_mode<synchronous>, transform_indices = @transform_6, window_bounds = array<i64: 128, 512>}, {pipeline_mode = #tpu.pipeline_mode<synchronous>, transform_indices = @transform_7, window_bounds = array<i64: 1, 512>}, {transform_indices = @transform_8, window_bounds = array<i64: 8, 8, 128>}]} {
    %c0_i32 = arith.constant 0 : i32
    %0 = arith.cmpi eq, %arg1, %c0_i32 : i32
    %1 = arith.extui %0 : i1 to i32
    %c0_i32_0 = arith.constant 0 : i32
    %2 = arith.cmpi ne, %1, %c0_i32_0 : i32
    scf.if %2 {
      %cst_51 = arith.constant 0.000000e+00 : f32
      %37 = vector.broadcast %cst_51 : f32 to vector<8x128xf32>
      %c0_52 = arith.constant 0 : index
      %c0_53 = arith.constant 0 : index
      %38 = vector.load %arg11[%c0_52, %c0_53] : memref<8x128xf32, #tpu.memory_space<vmem>>, vector<8x128xf32>
      tpu.vector_store %arg11[%c0_52, %c0_53], %37 {strides = array<i32>} : memref<8x128xf32, #tpu.memory_space<vmem>>, vector<8x128xf32>,
      %cst_54 = arith.constant 0.000000e+00 : f32
      %39 = vector.broadcast %cst_54 : f32 to vector<8x128xf32>
      %c0_55 = arith.constant 0 : index
      %c0_56 = arith.constant 0 : index
      %40 = vector.load %arg12[%c0_55, %c0_56] : memref<8x128xf32, #tpu.memory_space<vmem>>, vector<8x128xf32>
      tpu.vector_store %arg12[%c0_55, %c0_56], %39 {strides = array<i32>} : memref<8x128xf32, #tpu.memory_space<vmem>>, vector<8x128xf32>,
      %cst_57 = arith.constant 0.000000e+00 : f32
      %41 = vector.broadcast %cst_57 : f32 to vector<8x128xf32>
      %c0_58 = arith.constant 0 : index
      %c0_59 = arith.constant 0 : index
      %42 = vector.load %arg13[%c0_58, %c0_59] : memref<8x128xf32, #tpu.memory_space<vmem>>, vector<8x128xf32>
      tpu.vector_store %arg13[%c0_58, %c0_59], %41 {strides = array<i32>} : memref<8x128xf32, #tpu.memory_space<vmem>>, vector<8x128xf32>,
      %cst_60 = arith.constant 0.000000e+00 : f32
      %43 = vector.broadcast %cst_60 : f32 to vector<8x128xf32>
      %c0_61 = arith.constant 0 : index
      %c0_62 = arith.constant 0 : index
      %44 = vector.load %arg14[%c0_61, %c0_62] : memref<8x128xf32, #tpu.memory_space<vmem>>, vector<8x128xf32>
      tpu.vector_store %arg14[%c0_61, %c0_62], %43 {strides = array<i32>} : memref<8x128xf32, #tpu.memory_space<vmem>>, vector<8x128xf32>,
      %cst_63 = arith.constant 0.000000e+00 : f32
      %45 = vector.broadcast %cst_63 : f32 to vector<8x128xf32>
      %c0_64 = arith.constant 0 : index
      %c0_65 = arith.constant 0 : index
      %46 = vector.load %arg15[%c0_64, %c0_65] : memref<8x128xf32, #tpu.memory_space<vmem>>, vector<8x128xf32>
      tpu.vector_store %arg15[%c0_64, %c0_65], %45 {strides = array<i32>} : memref<8x128xf32, #tpu.memory_space<vmem>>, vector<8x128xf32>,
      %cst_66 = arith.constant 0.000000e+00 : f32
      %47 = vector.broadcast %cst_66 : f32 to vector<8x128xf32>
      %c0_67 = arith.constant 0 : index
      %c0_68 = arith.constant 0 : index
      %48 = vector.load %arg16[%c0_67, %c0_68] : memref<8x128xf32, #tpu.memory_space<vmem>>, vector<8x128xf32>
      tpu.vector_store %arg16[%c0_67, %c0_68], %47 {strides = array<i32>} : memref<8x128xf32, #tpu.memory_space<vmem>>, vector<8x128xf32>,
    } else {
    }
    %c0 = arith.constant 0 : index
    %c0_1 = arith.constant 0 : index
    %3 = vector.load %arg11[%c0, %c0_1] : memref<8x128xf32, #tpu.memory_space<vmem>>, vector<8x128xf32>
    %c0_2 = arith.constant 0 : index
    %c0_3 = arith.constant 0 : index
    %4 = vector.load %arg12[%c0_2, %c0_3] : memref<8x128xf32, #tpu.memory_space<vmem>>, vector<8x128xf32>
    %c0_4 = arith.constant 0 : index
    %c0_5 = arith.constant 0 : index
    %5 = vector.load %arg13[%c0_4, %c0_5] : memref<8x128xf32, #tpu.memory_space<vmem>>, vector<8x128xf32>
    %c0_6 = arith.constant 0 : index
    %c0_7 = arith.constant 0 : index
    %6 = vector.load %arg14[%c0_6, %c0_7] : memref<8x128xf32, #tpu.memory_space<vmem>>, vector<8x128xf32>
    %c0_8 = arith.constant 0 : index
    %c0_9 = arith.constant 0 : index
    %7 = vector.load %arg15[%c0_8, %c0_9] : memref<8x128xf32, #tpu.memory_space<vmem>>, vector<8x128xf32>
    %c0_10 = arith.constant 0 : index
    %c0_11 = arith.constant 0 : index
    %8 = vector.load %arg16[%c0_10, %c0_11] : memref<8x128xf32, #tpu.memory_space<vmem>>, vector<8x128xf32>
    %c0_i32_12 = arith.constant 0 : i32
    %c8_i32 = arith.constant 8 : i32
    %9 = arith.addi %c0_i32_12, %c8_i32 : i32
    %c1_i32 = arith.constant 1 : i32
    %10:2 = scf.for %arg21 = %c0_i32_12 to %9 step %c1_i32 iter_args(%arg22 = %3, %arg23 = %4) -> (vector<8x128xf32>, vector<8x128xf32>)  : i32 {
      %c8_i32_51 = arith.constant 8 : i32
      %37 = arith.muli %arg21, %c8_i32_51 : i32
      %38 = tpu.assume_multiple %37, 8 : i32
      %c0_i32_52 = arith.constant 0 : i32
      %39 = arith.addi %c0_i32_52, %arg21 : i32
      %40 = arith.index_cast %39 : i32 to index
      %c0_53 = arith.constant 0 : index
      %c0_54 = arith.constant 0 : index
      %41 = vector.load %arg2[%40, %c0_53, %c0_54] : memref<8x8x512xf32, #tpu.memory_space<vmem>>, vector<1x8x512xf32>
      %42 = vector.shape_cast %41 : vector<1x8x512xf32> to vector<8x512xf32>
      %43 = arith.truncf %arg22 : vector<8x128xf32> to vector<8x128xbf16>
      %c0_55 = arith.constant 0 : index
      %c0_56 = arith.constant 0 : index
      %44 = vector.load %arg3[%c0_55, %c0_56] : memref<128x512xbf16, #tpu.memory_space<vmem>>, vector<128x512xbf16>
      %cst_57 = arith.constant dense<0.000000e+00> : vector<8x512xf32>
      %45 = tpu.matmul %43, %44, %cst_57 {dimension_numbers = #tpu.dot_dimension_numbers<[1], [0], [0], [1], [0, 0, 1, 1], [], []>} : vector<8x128xbf16>, vector<128x512xbf16>, vector<8x512xf32> -> vector<8x512xf32>
      %46 = arith.addf %42, %45 : vector<8x512xf32>
      %47 = vector.extract_strided_slice %46 {offsets = [0, 0], sizes = [8, 128], strides = [1, 1]} : vector<8x512xf32> to vector<8x128xf32>
      %48 = arith.negf %47 : vector<8x128xf32>
      %49 = math.exp %48 : vector<8x128xf32>
      %cst_58 = arith.constant 1.000000e+00 : f32
      %50 = vector.broadcast %cst_58 : f32 to vector<8x128xf32>
      %51 = arith.addf %50, %49 : vector<8x128xf32>
      %52 = arith.divf %50, %51 : vector<8x128xf32>
      %53 = vector.extract_strided_slice %46 {offsets = [0, 128], sizes = [8, 128], strides = [1, 1]} : vector<8x512xf32> to vector<8x128xf32>
      %54 = arith.negf %53 : vector<8x128xf32>
      %55 = math.exp %54 : vector<8x128xf32>
      %cst_59 = arith.constant 1.000000e+00 : f32
      %56 = vector.broadcast %cst_59 : f32 to vector<8x128xf32>
      %57 = arith.addf %56, %55 : vector<8x128xf32>
      %58 = arith.divf %56, %57 : vector<8x128xf32>
      %59 = vector.extract_strided_slice %46 {offsets = [0, 256], sizes = [8, 128], strides = [1, 1]} : vector<8x512xf32> to vector<8x128xf32>
      %60 = math.tanh %59 : vector<8x128xf32>
      %61 = vector.extract_strided_slice %46 {offsets = [0, 384], sizes = [8, 128], strides = [1, 1]} : vector<8x512xf32> to vector<8x128xf32>
      %62 = arith.negf %61 : vector<8x128xf32>
      %63 = math.exp %62 : vector<8x128xf32>
      %cst_60 = arith.constant 1.000000e+00 : f32
      %64 = vector.broadcast %cst_60 : f32 to vector<8x128xf32>
      %65 = arith.addf %64, %63 : vector<8x128xf32>
      %66 = arith.divf %64, %65 : vector<8x128xf32>
      %67 = arith.mulf %58, %arg23 : vector<8x128xf32>
      %68 = arith.mulf %52, %60 : vector<8x128xf32>
      %69 = arith.addf %67, %68 : vector<8x128xf32>
      %70 = math.tanh %69 : vector<8x128xf32>
      %71 = arith.mulf %66, %70 : vector<8x128xf32>
      %72 = arith.index_cast %38 : i32 to index
      %c0_61 = arith.constant 0 : index
      %73 = vector.load %arg17[%72, %c0_61] : memref<64x128xf32, #tpu.memory_space<vmem>>, vector<8x128xf32>
      tpu.vector_store %arg17[%72, %c0_61], %71 {strides = array<i32>} : memref<64x128xf32, #tpu.memory_space<vmem>>, vector<8x128xf32>,
      scf.yield %71, %69 : vector<8x128xf32>, vector<8x128xf32>
    }
    %c8_i32_13 = arith.constant 8 : i32
    %c0_14 = arith.constant 0 : index
    %c0_15 = arith.constant 0 : index
    %11 = vector.load %arg17[%c0_14, %c0_15] : memref<64x128xf32, #tpu.memory_space<vmem>>, vector<64x128xf32>
    %12 = arith.truncf %11 : vector<64x128xf32> to vector<64x128xbf16>
    %c0_16 = arith.constant 0 : index
    %c0_17 = arith.constant 0 : index
    %13 = vector.load %arg4[%c0_16, %c0_17] : memref<128x512xbf16, #tpu.memory_space<vmem>>, vector<128x512xbf16>
    %cst = arith.constant dense<0.000000e+00> : vector<64x512xf32>
    %14 = tpu.matmul %12, %13, %cst {dimension_numbers = #tpu.dot_dimension_numbers<[1], [0], [0], [1], [0, 0, 1, 1], [], []>} : vector<64x128xbf16>, vector<128x512xbf16>, vector<64x512xf32> -> vector<64x512xf32>
    %c0_18 = arith.constant 0 : index
    %c0_19 = arith.constant 0 : index
    %15 = vector.load %arg6[%c0_18, %c0_19] : memref<1x512xf32, #tpu.memory_space<vmem>>, vector<1x512xf32>
    %16 = vector.broadcast %15 : vector<1x512xf32> to vector<64x512xf32>
    %17 = arith.addf %14, %16 : vector<64x512xf32>
    %c0_20 = arith.constant 0 : index
    %c0_21 = arith.constant 0 : index
    %18 = vector.load %arg18[%c0_20, %c0_21] : memref<64x512xf32, #tpu.memory_space<vmem>>, vector<64x512xf32>
    tpu.vector_store %arg18[%c0_20, %c0_21], %17 {strides = array<i32>} : memref<64x512xf32, #tpu.memory_space<vmem>>, vector<64x512xf32>,
    %c0_i32_22 = arith.constant 0 : i32
    %c8_i32_23 = arith.constant 8 : i32
    %19 = arith.addi %c0_i32_22, %c8_i32_23 : i32
    %c1_i32_24 = arith.constant 1 : i32
    %20:2 = scf.for %arg21 = %c0_i32_22 to %19 step %c1_i32_24 iter_args(%arg22 = %5, %arg23 = %6) -> (vector<8x128xf32>, vector<8x128xf32>)  : i32 {
      %c8_i32_51 = arith.constant 8 : i32
      %37 = arith.muli %arg21, %c8_i32_51 : i32
      %38 = tpu.assume_multiple %37, 8 : i32
      %39 = arith.index_cast %38 : i32 to index
      %c0_52 = arith.constant 0 : index
      %40 = vector.load %arg18[%39, %c0_52] : memref<64x512xf32, #tpu.memory_space<vmem>>, vector<8x512xf32>
      %41 = arith.truncf %arg22 : vector<8x128xf32> to vector<8x128xbf16>
      %c0_53 = arith.constant 0 : index
      %c0_54 = arith.constant 0 : index
      %42 = vector.load %arg5[%c0_53, %c0_54] : memref<128x512xbf16, #tpu.memory_space<vmem>>, vector<128x512xbf16>
      %cst_55 = arith.constant dense<0.000000e+00> : vector<8x512xf32>
      %43 = tpu.matmul %41, %42, %cst_55 {dimension_numbers = #tpu.dot_dimension_numbers<[1], [0], [0], [1], [0, 0, 1, 1], [], []>} : vector<8x128xbf16>, vector<128x512xbf16>, vector<8x512xf32> -> vector<8x512xf32>
      %44 = arith.addf %40, %43 : vector<8x512xf32>
      %45 = vector.extract_strided_slice %44 {offsets = [0, 0], sizes = [8, 128], strides = [1, 1]} : vector<8x512xf32> to vector<8x128xf32>
      %46 = arith.negf %45 : vector<8x128xf32>
      %47 = math.exp %46 : vector<8x128xf32>
      %cst_56 = arith.constant 1.000000e+00 : f32
      %48 = vector.broadcast %cst_56 : f32 to vector<8x128xf32>
      %49 = arith.addf %48, %47 : vector<8x128xf32>
      %50 = arith.divf %48, %49 : vector<8x128xf32>
      %51 = vector.extract_strided_slice %44 {offsets = [0, 128], sizes = [8, 128], strides = [1, 1]} : vector<8x512xf32> to vector<8x128xf32>
      %52 = arith.negf %51 : vector<8x128xf32>
      %53 = math.exp %52 : vector<8x128xf32>
      %cst_57 = arith.constant 1.000000e+00 : f32
      %54 = vector.broadcast %cst_57 : f32 to vector<8x128xf32>
      %55 = arith.addf %54, %53 : vector<8x128xf32>
      %56 = arith.divf %54, %55 : vector<8x128xf32>
      %57 = vector.extract_strided_slice %44 {offsets = [0, 256], sizes = [8, 128], strides = [1, 1]} : vector<8x512xf32> to vector<8x128xf32>
      %58 = math.tanh %57 : vector<8x128xf32>
      %59 = vector.extract_strided_slice %44 {offsets = [0, 384], sizes = [8, 128], strides = [1, 1]} : vector<8x512xf32> to vector<8x128xf32>
      %60 = arith.negf %59 : vector<8x128xf32>
      %61 = math.exp %60 : vector<8x128xf32>
      %cst_58 = arith.constant 1.000000e+00 : f32
      %62 = vector.broadcast %cst_58 : f32 to vector<8x128xf32>
      %63 = arith.addf %62, %61 : vector<8x128xf32>
      %64 = arith.divf %62, %63 : vector<8x128xf32>
      %65 = arith.mulf %56, %arg23 : vector<8x128xf32>
      %66 = arith.mulf %50, %58 : vector<8x128xf32>
      %67 = arith.addf %65, %66 : vector<8x128xf32>
      %68 = math.tanh %67 : vector<8x128xf32>
      %69 = arith.mulf %64, %68 : vector<8x128xf32>
      %70 = arith.index_cast %38 : i32 to index
      %c0_59 = arith.constant 0 : index
      %71 = vector.load %arg19[%70, %c0_59] : memref<64x128xf32, #tpu.memory_space<vmem>>, vector<8x128xf32>
      tpu.vector_store %arg19[%70, %c0_59], %69 {strides = array<i32>} : memref<64x128xf32, #tpu.memory_space<vmem>>, vector<8x128xf32>,
      scf.yield %69, %67 : vector<8x128xf32>, vector<8x128xf32>
    }
    %c8_i32_25 = arith.constant 8 : i32
    %c0_26 = arith.constant 0 : index
    %c0_27 = arith.constant 0 : index
    %21 = vector.load %arg19[%c0_26, %c0_27] : memref<64x128xf32, #tpu.memory_space<vmem>>, vector<64x128xf32>
    %22 = arith.truncf %21 : vector<64x128xf32> to vector<64x128xbf16>
    %c0_28 = arith.constant 0 : index
    %c0_29 = arith.constant 0 : index
    %23 = vector.load %arg7[%c0_28, %c0_29] : memref<128x512xbf16, #tpu.memory_space<vmem>>, vector<128x512xbf16>
    %cst_30 = arith.constant dense<0.000000e+00> : vector<64x512xf32>
    %24 = tpu.matmul %22, %23, %cst_30 {dimension_numbers = #tpu.dot_dimension_numbers<[1], [0], [0], [1], [0, 0, 1, 1], [], []>} : vector<64x128xbf16>, vector<128x512xbf16>, vector<64x512xf32> -> vector<64x512xf32>
    %c0_31 = arith.constant 0 : index
    %c0_32 = arith.constant 0 : index
    %25 = vector.load %arg9[%c0_31, %c0_32] : memref<1x512xf32, #tpu.memory_space<vmem>>, vector<1x512xf32>
    %26 = vector.broadcast %25 : vector<1x512xf32> to vector<64x512xf32>
    %27 = arith.addf %24, %26 : vector<64x512xf32>
    %c0_33 = arith.constant 0 : index
    %c0_34 = arith.constant 0 : index
    %28 = vector.load %arg20[%c0_33, %c0_34] : memref<64x512xf32, #tpu.memory_space<vmem>>, vector<64x512xf32>
    tpu.vector_store %arg20[%c0_33, %c0_34], %27 {strides = array<i32>} : memref<64x512xf32, #tpu.memory_space<vmem>>, vector<64x512xf32>,
    %c0_i32_35 = arith.constant 0 : i32
    %c8_i32_36 = arith.constant 8 : i32
    %29 = arith.addi %c0_i32_35, %c8_i32_36 : i32
    %c1_i32_37 = arith.constant 1 : i32
    %30:2 = scf.for %arg21 = %c0_i32_35 to %29 step %c1_i32_37 iter_args(%arg22 = %7, %arg23 = %8) -> (vector<8x128xf32>, vector<8x128xf32>)  : i32 {
      %c8_i32_51 = arith.constant 8 : i32
      %37 = arith.muli %arg21, %c8_i32_51 : i32
      %38 = tpu.assume_multiple %37, 8 : i32
      %39 = arith.index_cast %38 : i32 to index
      %c0_52 = arith.constant 0 : index
      %40 = vector.load %arg20[%39, %c0_52] : memref<64x512xf32, #tpu.memory_space<vmem>>, vector<8x512xf32>
      %41 = arith.truncf %arg22 : vector<8x128xf32> to vector<8x128xbf16>
      %c0_53 = arith.constant 0 : index
      %c0_54 = arith.constant 0 : index
      %42 = vector.load %arg8[%c0_53, %c0_54] : memref<128x512xbf16, #tpu.memory_space<vmem>>, vector<128x512xbf16>
      %cst_55 = arith.constant dense<0.000000e+00> : vector<8x512xf32>
      %43 = tpu.matmul %41, %42, %cst_55 {dimension_numbers = #tpu.dot_dimension_numbers<[1], [0], [0], [1], [0, 0, 1, 1], [], []>} : vector<8x128xbf16>, vector<128x512xbf16>, vector<8x512xf32> -> vector<8x512xf32>
      %44 = arith.addf %40, %43 : vector<8x512xf32>
      %45 = vector.extract_strided_slice %44 {offsets = [0, 0], sizes = [8, 128], strides = [1, 1]} : vector<8x512xf32> to vector<8x128xf32>
      %46 = arith.negf %45 : vector<8x128xf32>
      %47 = math.exp %46 : vector<8x128xf32>
      %cst_56 = arith.constant 1.000000e+00 : f32
      %48 = vector.broadcast %cst_56 : f32 to vector<8x128xf32>
      %49 = arith.addf %48, %47 : vector<8x128xf32>
      %50 = arith.divf %48, %49 : vector<8x128xf32>
      %51 = vector.extract_strided_slice %44 {offsets = [0, 128], sizes = [8, 128], strides = [1, 1]} : vector<8x512xf32> to vector<8x128xf32>
      %52 = arith.negf %51 : vector<8x128xf32>
      %53 = math.exp %52 : vector<8x128xf32>
      %cst_57 = arith.constant 1.000000e+00 : f32
      %54 = vector.broadcast %cst_57 : f32 to vector<8x128xf32>
      %55 = arith.addf %54, %53 : vector<8x128xf32>
      %56 = arith.divf %54, %55 : vector<8x128xf32>
      %57 = vector.extract_strided_slice %44 {offsets = [0, 256], sizes = [8, 128], strides = [1, 1]} : vector<8x512xf32> to vector<8x128xf32>
      %58 = math.tanh %57 : vector<8x128xf32>
      %59 = vector.extract_strided_slice %44 {offsets = [0, 384], sizes = [8, 128], strides = [1, 1]} : vector<8x512xf32> to vector<8x128xf32>
      %60 = arith.negf %59 : vector<8x128xf32>
      %61 = math.exp %60 : vector<8x128xf32>
      %cst_58 = arith.constant 1.000000e+00 : f32
      %62 = vector.broadcast %cst_58 : f32 to vector<8x128xf32>
      %63 = arith.addf %62, %61 : vector<8x128xf32>
      %64 = arith.divf %62, %63 : vector<8x128xf32>
      %65 = arith.mulf %56, %arg23 : vector<8x128xf32>
      %66 = arith.mulf %50, %58 : vector<8x128xf32>
      %67 = arith.addf %65, %66 : vector<8x128xf32>
      %68 = math.tanh %67 : vector<8x128xf32>
      %69 = arith.mulf %64, %68 : vector<8x128xf32>
      %c0_i32_59 = arith.constant 0 : i32
      %70 = arith.addi %c0_i32_59, %arg21 : i32
      %71 = arith.index_cast %70 : i32 to index
      %c0_60 = arith.constant 0 : index
      %c0_61 = arith.constant 0 : index
      %72 = vector.load %arg10[%71, %c0_60, %c0_61] : memref<8x8x128xf32, #tpu.memory_space<vmem>>, vector<1x8x128xf32>
      %73 = vector.shape_cast %72 : vector<1x8x128xf32> to vector<8x128xf32>
      %74 = vector.shape_cast %69 : vector<8x128xf32> to vector<1x8x128xf32>
      tpu.vector_store %arg10[%71, %c0_60, %c0_61], %74 {strides = array<i32>} : memref<8x8x128xf32, #tpu.memory_space<vmem>>, vector<1x8x128xf32>,
      scf.yield %69, %67 : vector<8x128xf32>, vector<8x128xf32>
    }
    %c8_i32_38 = arith.constant 8 : i32
    %c0_39 = arith.constant 0 : index
    %c0_40 = arith.constant 0 : index
    %31 = vector.load %arg11[%c0_39, %c0_40] : memref<8x128xf32, #tpu.memory_space<vmem>>, vector<8x128xf32>
    tpu.vector_store %arg11[%c0_39, %c0_40], %10#0 {strides = array<i32>} : memref<8x128xf32, #tpu.memory_space<vmem>>, vector<8x128xf32>,
    %c0_41 = arith.constant 0 : index
    %c0_42 = arith.constant 0 : index
    %32 = vector.load %arg12[%c0_41, %c0_42] : memref<8x128xf32, #tpu.memory_space<vmem>>, vector<8x128xf32>
    tpu.vector_store %arg12[%c0_41, %c0_42], %10#1 {strides = array<i32>} : memref<8x128xf32, #tpu.memory_space<vmem>>, vector<8x128xf32>,
    %c0_43 = arith.constant 0 : index
    %c0_44 = arith.constant 0 : index
    %33 = vector.load %arg13[%c0_43, %c0_44] : memref<8x128xf32, #tpu.memory_space<vmem>>, vector<8x128xf32>
    tpu.vector_store %arg13[%c0_43, %c0_44], %20#0 {strides = array<i32>} : memref<8x128xf32, #tpu.memory_space<vmem>>, vector<8x128xf32>,
    %c0_45 = arith.constant 0 : index
    %c0_46 = arith.constant 0 : index
    %34 = vector.load %arg14[%c0_45, %c0_46] : memref<8x128xf32, #tpu.memory_space<vmem>>, vector<8x128xf32>
    tpu.vector_store %arg14[%c0_45, %c0_46], %20#1 {strides = array<i32>} : memref<8x128xf32, #tpu.memory_space<vmem>>, vector<8x128xf32>,
    %c0_47 = arith.constant 0 : index
    %c0_48 = arith.constant 0 : index
    %35 = vector.load %arg15[%c0_47, %c0_48] : memref<8x128xf32, #tpu.memory_space<vmem>>, vector<8x128xf32>
    tpu.vector_store %arg15[%c0_47, %c0_48], %30#0 {strides = array<i32>} : memref<8x128xf32, #tpu.memory_space<vmem>>, vector<8x128xf32>,
    %c0_49 = arith.constant 0 : index
    %c0_50 = arith.constant 0 : index
    %36 = vector.load %arg16[%c0_49, %c0_50] : memref<8x128xf32, #tpu.memory_space<vmem>>, vector<8x128xf32>
    tpu.vector_store %arg16[%c0_49, %c0_50], %30#1 {strides = array<i32>} : memref<8x128xf32, #tpu.memory_space<vmem>>, vector<8x128xf32>,
    return
  }
  func.func @transform_0(%arg0: i32, %arg1: i32) -> (i32, i32, i32) {
    %c0_i32 = arith.constant 0 : i32
    %c0_i32_0 = arith.constant 0 : i32
    return %arg1, %arg0, %c0_i32 : i32, i32, i32
  }
  func.func @transform_1(%arg0: i32, %arg1: i32) -> (i32, i32) {
    %c0_i32 = arith.constant 0 : i32
    %c0_i32_0 = arith.constant 0 : i32
    %c0_i32_1 = arith.constant 0 : i32
    return %c0_i32, %c0_i32_0 : i32, i32
  }
  func.func @transform_2(%arg0: i32, %arg1: i32) -> (i32, i32) {
    %c0_i32 = arith.constant 0 : i32
    %c0_i32_0 = arith.constant 0 : i32
    %c0_i32_1 = arith.constant 0 : i32
    return %c0_i32, %c0_i32_0 : i32, i32
  }
  func.func @transform_3(%arg0: i32, %arg1: i32) -> (i32, i32) {
    %c0_i32 = arith.constant 0 : i32
    %c0_i32_0 = arith.constant 0 : i32
    %c0_i32_1 = arith.constant 0 : i32
    return %c0_i32, %c0_i32_0 : i32, i32
  }
  func.func @transform_4(%arg0: i32, %arg1: i32) -> (i32, i32) {
    %c0_i32 = arith.constant 0 : i32
    %c0_i32_0 = arith.constant 0 : i32
    %c0_i32_1 = arith.constant 0 : i32
    return %c0_i32, %c0_i32_0 : i32, i32
  }
  func.func @transform_5(%arg0: i32, %arg1: i32) -> (i32, i32) {
    %c0_i32 = arith.constant 0 : i32
    %c0_i32_0 = arith.constant 0 : i32
    %c0_i32_1 = arith.constant 0 : i32
    return %c0_i32, %c0_i32_0 : i32, i32
  }
  func.func @transform_6(%arg0: i32, %arg1: i32) -> (i32, i32) {
    %c0_i32 = arith.constant 0 : i32
    %c0_i32_0 = arith.constant 0 : i32
    %c0_i32_1 = arith.constant 0 : i32
    return %c0_i32, %c0_i32_0 : i32, i32
  }
  func.func @transform_7(%arg0: i32, %arg1: i32) -> (i32, i32) {
    %c0_i32 = arith.constant 0 : i32
    %c0_i32_0 = arith.constant 0 : i32
    %c0_i32_1 = arith.constant 0 : i32
    return %c0_i32, %c0_i32_0 : i32, i32
  }
  func.func @transform_8(%arg0: i32, %arg1: i32) -> (i32, i32, i32) {
    %c0_i32 = arith.constant 0 : i32
    %c0_i32_0 = arith.constant 0 : i32
    return %arg1, %arg0, %c0_i32 : i32, i32, i32
  }
}

</mosaic_0001>

<bundles_post_ra>
// kernel: tpu_custom_call.1
= control target key start
LH: loop header
LB: loop body
LE: loop exit
PB: predicated region body
PF: predicated region fallthrough
CT: control target
= control target key end

     0   :  { %13 = vsyncpa [#allocation13], 0  ;;  %s3142_s0 = inlined_call_operand.hbm [shape: f32[8,8,512], index: 0, kind: input, shape index: {}]   ;;  %s3143_s1 = inlined_call_operand.hbm [shape: bf16[128,512], index: 1, kind: input, shape index: {}]   ;;  %s3144_s2 = inlined_call_operand.hbm [shape: bf16[128,512], index: 2, kind: input, shape index: {}]   ;;  %s3145_s3 = inlined_call_operand.hbm [shape: bf16[128,512], index: 3, kind: input, shape index: {}]   ;;  %s3146_s4 = inlined_call_operand.vmem [shape: f32[1,512], index: 4, kind: input, shape index: {}]   ;;  %s3147_s5 = inlined_call_operand.hbm [shape: bf16[128,512], index: 5, kind: input, shape index: {}]   ;;  %s3148_s6 = inlined_call_operand.hbm [shape: bf16[128,512], index: 6, kind: input, shape index: {}]   ;;  %s3149_s7 = inlined_call_operand.vmem [shape: f32[1,512], index: 7, kind: input, shape index: {}]   ;;  %s3150_s8 = inlined_call_operand.hbm [shape: f32[8,8,128], index: 8, kind: output, shape index: {}]  }
   0x1   :  { %14 = vsyncpa [#allocation16], 0 }
   0x2   :  { %15 = vsyncpa [#allocation19], 0 }
   0x3   :  { %16 = vsyncpa [#allocation22], 0 }
   0x4   :  { %17 = vsyncpa [#allocation14], 0  ;;  %s2770_s27 = smov [#allocation15]   ;;  %s2534_s9 = scalar_lea.hbm %s3143_s1, 4096 }
   0x5   :  { %s35_s28 = sshll.u32 %s2770_s27, 4  ;;  %p2535_p0 = scmp.ne.s32.totalorder %s3143_s1, %s2534_s9  ;;  %s36_s28 = int_to_ptr.vmem [resolvable:$true] %s35_s28 }
   0x6   :  { %p2538_p1 = scmp.lt.u32.totalorder %s2534_s9, %s3143_s1 }
   0x8   :  { %p2540_p2 = pnand %p2538_p1, %p2535_p0 }
   0xa   :  { %2543 = shalt.err (!%p2540_p2)
}
   0xb   :  { %s2544_s14 = scalar_lea.vmem %s36_s28, 4096  ;;  %p2549_p4 = scmp.lt.s32.totalorder %s36_s28, %s36_s28 }
   0xc   :  { %p2545_p3 = scmp.ne.s32.totalorder %s36_s28, %s2544_s14  ;;  %p2550_p5 = scmp.lt.s32.totalorder %s2544_s14, %s2544_s14 }
   0xe   :  { %p2551_p6 = por %p2550_p5, %p2549_p4 }
  0x10   :  { %p2552_p7 = pnand %p2551_p6, %p2545_p3 }
  0x12   :  { %2555 = shalt.err (!%p2552_p7)
}
  0x13   :  { %s2771_s15 = smov 256   ;;  %s2772_s16 = smov 16  }
  0x14   :  { %41 = dma.hbm_to_vmem [thread:$0]  %s3143_s1, 4096, %s36_s28, [#allocation16], %s2771_s15, %s2771_s15, %s2772_s16  }
  0x15   :  { %s2773_s19 = smov [#allocation18]   ;;  %s2774_s21 = smov [#allocation12]  }
  0x16   :  { %s59_s20 = sshll.u32 %s2773_s19, 4  ;;  %s23_s22 = sshll.u32 %s2774_s21, 4  ;;  %s60_s20 = int_to_ptr.vmem [resolvable:$true] %s59_s20  ;;  %s24_s22 = int_to_ptr.vmem [resolvable:$true] %s23_s22 }
  0x17   :  { %s2556_s25 = scalar_lea.hbm %s3145_s3, 4096 }
  0x18   :  { %p2557_p8 = scmp.ne.s32.totalorder %s3145_s3, %s2556_s25  ;;  %p2560_p9 = scmp.lt.u32.totalorder %s2556_s25, %s3145_s3 }
  0x1a   :  { %p2562_p10 = pnand %p2560_p9, %p2557_p8 }
  0x1c   :  { %2565 = shalt.err (!%p2562_p10)
}
  0x1d   :  { %s2566_s1 = scalar_lea.vmem %s60_s20, 4096  ;;  %p2571_p12 = scmp.lt.s32.totalorder %s60_s20, %s60_s20 }
  0x1e   :  { %p2567_p11 = scmp.ne.s32.totalorder %s60_s20, %s2566_s1  ;;  %p2572_p13 = scmp.lt.s32.totalorder %s2566_s1, %s2566_s1 }
  0x20   :  { %p2573_p0 = por %p2572_p13, %p2571_p12 }
  0x22   :  { %p2574_p1 = pnand %p2573_p0, %p2567_p11 }
  0x24   :  { %2577 = shalt.err (!%p2574_p1)
}
  0x25   :  { %65 = dma.hbm_to_vmem [thread:$0]  %s3145_s3, 4096, %s60_s20, [#allocation19], %s2771_s15, %s2771_s15, %s2772_s16  }
  0x26   :  { %s2578_s12 = scalar_lea.hbm %s3142_s0, 4096 }
  0x27   :  { %p2579_p2 = scmp.ne.s32.totalorder %s3142_s0, %s2578_s12  ;;  %p2582_p3 = scmp.lt.u32.totalorder %s2578_s12, %s3142_s0 }
  0x29   :  { %p2584_p4 = pnand %p2582_p3, %p2579_p2 }
  0x2b   :  { %2587 = shalt.err (!%p2584_p4)
}
  0x2c   :  { %s2588_s19 = scalar_lea.vmem %s24_s22, 4096  ;;  %p2593_p6 = scmp.lt.s32.totalorder %s24_s22, %s24_s22 }
  0x2d   :  { %p2589_p5 = scmp.ne.s32.totalorder %s24_s22, %s2588_s19  ;;  %p2594_p7 = scmp.lt.s32.totalorder %s2588_s19, %s2588_s19 }
  0x2f   :  { %p2595_p8 = por %p2594_p7, %p2593_p6 }
  0x31   :  { %p2596_p9 = pnand %p2595_p8, %p2589_p5 }
  0x33   :  { %2599 = shalt.err (!%p2596_p9)
}
  0x34   :  { %s2775_s3 = smov 512   ;;  %s2776_s20 = smov 32  }
  0x35   :  { %29 = dma.hbm_to_vmem [thread:$0]  %s3142_s0, 4096, %s24_s22, [#allocation13], %s2775_s3, %s2775_s3, %s2776_s20  }
  0x36   :  { %s2777_s24 = smov [#allocation17]   ;;  %s2778_s26 = smov [#allocation20]  }
  0x37   :  { %s47_s25 = sshll.u32 %s2777_s24, 4  ;;  %s73_s27 = sshll.u32 %s2778_s26, 4  ;;  %s48_s25 = int_to_ptr.vmem [resolvable:$true] %s47_s25  ;;  %s74_s27 = int_to_ptr.vmem [resolvable:$true] %s73_s27 }
  0x38   :  { %s2600_s1 = scalar_lea.hbm %s3144_s2, 4096 }
  0x39   :  { %p2601_p10 = scmp.ne.s32.totalorder %s3144_s2, %s2600_s1  ;;  %p2604_p11 = scmp.lt.u32.totalorder %s2600_s1, %s3144_s2 }
  0x3b   :  { %p2606_p12 = pnand %p2604_p11, %p2601_p10 }
  0x3d   :  { %2609 = shalt.err (!%p2606_p12)
}
  0x3e   :  { %s2610_s0 = scalar_lea.vmem %s48_s25, 4096  ;;  %p2615_p0 = scmp.lt.s32.totalorder %s48_s25, %s48_s25 }
  0x3f   :  { %p2611_p13 = scmp.ne.s32.totalorder %s48_s25, %s2610_s0  ;;  %p2616_p1 = scmp.lt.s32.totalorder %s2610_s0, %s2610_s0 }
  0x41   :  { %p2617_p2 = por %p2616_p1, %p2615_p0 }
  0x43   :  { %p2618_p3 = pnand %p2617_p2, %p2611_p13 }
  0x45   :  { %2621 = shalt.err (!%p2618_p3)
}
  0x46   :  { %53 = dma.hbm_to_vmem [thread:$0]  %s3144_s2, 4096, %s48_s25, [#allocation16], %s2771_s15, %s2771_s15, %s2772_s16  }
  0x47   :  { %s2622_s17 = scalar_lea.hbm %s3147_s5, 4096 }
  0x48   :  { %p2623_p4 = scmp.ne.s32.totalorder %s3147_s5, %s2622_s17  ;;  %p2626_p5 = scmp.lt.u32.totalorder %s2622_s17, %s3147_s5 }
  0x4a   :  { %p2628_p6 = pnand %p2626_p5, %p2623_p4 }
  0x4c   :  { %2631 = shalt.err (!%p2628_p6)
}
  0x4d   :  { %s2632_s21 = scalar_lea.vmem %s74_s27, 4096  ;;  %p2637_p8 = scmp.lt.s32.totalorder %s74_s27, %s74_s27 }
  0x4e   :  { %p2633_p7 = scmp.ne.s32.totalorder %s74_s27, %s2632_s21  ;;  %p2638_p9 = scmp.lt.s32.totalorder %s2632_s21, %s2632_s21 }
  0x50   :  { %p2639_p10 = por %p2638_p9, %p2637_p8 }
  0x52   :  { %p2640_p11 = pnand %p2639_p10, %p2633_p7 }
  0x54   :  { %2643 = shalt.err (!%p2640_p11)
}
  0x55   :  { %79 = dma.hbm_to_vmem [thread:$0]  %s3147_s5, 4096, %s74_s27, [#allocation19], %s2771_s15, %s2771_s15, %s2772_s16  }
  0x56   :  { %s2779_s24 = smov [#allocation21]   ;;  %s2644_s30 = scalar_lea.hbm %s3148_s6, 4096 }
  0x57   :  { %s85_s25 = sshll.u32 %s2779_s24, 4  ;;  %p2645_p12 = scmp.ne.s32.totalorder %s3148_s6, %s2644_s30  ;;  %s86_s25 = int_to_ptr.vmem [resolvable:$true] %s85_s25 }
  0x58   :  { %p2648_p13 = scmp.lt.u32.totalorder %s2644_s30, %s3148_s6 }
  0x5a   :  { %p2650_p0 = pnand %p2648_p13, %p2645_p12 }
  0x5c   :  { %2653 = shalt.err (!%p2650_p0)
}
  0x5d   :  { %s2654_s11 = scalar_lea.vmem %s86_s25, 4096  ;;  %p2659_p2 = scmp.lt.s32.totalorder %s86_s25, %s86_s25 }
  0x5e   :  { %p2655_p1 = scmp.ne.s32.totalorder %s86_s25, %s2654_s11  ;;  %p2660_p3 = scmp.lt.s32.totalorder %s2654_s11, %s2654_s11 }
  0x60   :  { %p2661_p4 = por %p2660_p3, %p2659_p2 }
  0x62   :  { %p2662_p5 = pnand %p2661_p4, %p2655_p1 }
  0x64   :  { %2665 = shalt.err (!%p2662_p5)
}
  0x65   :  { %91 = dma.hbm_to_vmem [thread:$0]  %s3148_s6, 4096, %s86_s25, [#allocation22], %s2771_s15, %s2771_s15, %s2772_s16  }
  0x66   :  { %2724 = dma.done.wait [#allocation13], 4096  }
  0x67   :  { %2725 = vsyncadd [#allocation13], 4294963200 }
  0x68   :  { %2726 = dma.done.wait [#allocation16], 8192  }
  0x69   :  { %2727 = vsyncadd [#allocation16], 4294959104 }
  0x6a   :  { %2728 = dma.done.wait [#allocation19], 8192  }
  0x6b   :  { %2729 = vsyncadd [#allocation19], 4294959104 }
  0x6c   :  { %2730 = dma.done.wait [#allocation22], 4096  }
  0x6d   :  { %2731 = vsyncadd [#allocation22], 4294963200  ;;  %v2919_v0 = vmov 0.0   ;;  %v2921_v1 = vmov 0.0   ;;  %s2923_s0 = smov 0  }
  0x6e LB: > { %v2246_v2 = vld [vmem:[#allocation15 + $0x4] ss:$16 sps:$4 sm:$0xff]   ;;  %v2248_v3 = vld [vmem:[#allocation15] ss:$16 sps:$4 sm:$0xff]   ;;  %v2780_v4 = vmov 0   ;;  %v145_v34 = vpack.c.bf16 %v2740_v1, %v2740_v1  ;;  %s2153_s6 = sshll.u32 %s2744_s0, 5  ;;  %s2744_s0 = sphi %s2923_s0, %s134_s0   ;;  %v2740_v1 = vphi %v2921_v1, %v447_v1   ;;  %v2736_v0 = vphi %v2919_v0, %v445_v0  }
  0x6f   : > { %370 = vmatprep.mubr.bf16.mxu0 %v2780_v4  ;;  %411 = vmatprep.mubr.bf16.mxu1 %v2780_v4  ;;  %v2249_v5 = vld [vmem:[#allocation15 + $0x24] ss:$16 sps:$4 sm:$0xff]   ;;  %v2251_v6 = vld [vmem:[#allocation15 + $0x20] ss:$16 sps:$4 sm:$0xff]   ;;  %v2257_v8 = vld [vmem:[#allocation15 + $0xc] ss:$16 sps:$4 sm:$0xff]  }
  0x70   : > { %338 = vmatprep.subr.bf16.mxu0 %v2246_v2  ;;  %v2252_v7 = vld [vmem:[#allocation15 + $0x44] ss:$16 sps:$4 sm:$0xff]   ;;  %v2260_v9 = vld [vmem:[#allocation15 + $0x8] ss:$16 sps:$4 sm:$0xff]   ;;  %v2254_v10 = vld [vmem:[#allocation15 + $0x40] ss:$16 sps:$4 sm:$0xff]   ;;  %379 = vmatprep.subr.bf16.mxu1 %v2257_v8 }
  0x71   : > { %339 = vmatpush1.bf16.msra.mxu0 %v2248_v3  ;;  %v2255_v11 = vld [vmem:[#allocation15 + $0x64] ss:$16 sps:$4 sm:$0xff]   ;;  %380 = vmatpush1.bf16.msra.mxu1 %v2260_v9  ;;  %v2263_v12 = vld [vmem:[#allocation15 + $0x2c] ss:$16 sps:$4 sm:$0xff]   ;;  %v2266_v13 = vld [vmem:[#allocation15 + $0x28] ss:$16 sps:$4 sm:$0xff]  }
  0x72   : > { %340 = vmatprep.subr.bf16.mxu0 %v2249_v5  ;;  %381 = vmatprep.subr.bf16.mxu1 %v2263_v12  ;;  %v2259_v14 = vld [vmem:[#allocation15 + $0x60] ss:$16 sps:$4 sm:$0xff]   ;;  %v2261_v15 = vld [vmem:[#allocation15 + $0x84] ss:$16 sps:$4 sm:$0xff]   ;;  %v2269_v16 = vld [vmem:[#allocation15 + $0x4c] ss:$16 sps:$4 sm:$0xff]  }
  0x73   : > { %v2272_v17 = vld [vmem:[#allocation15 + $0x48] ss:$16 sps:$4 sm:$0xff]   ;;  %v2275_v18 = vld [vmem:[#allocation15 + $0x6c] ss:$16 sps:$4 sm:$0xff]   ;;  %v2265_v19 = vld [vmem:[#allocation15 + $0x80] ss:$16 sps:$4 sm:$0xff]  }
  0x74   : > { %v2267_v20 = vld [vmem:[#allocation15 + $0xa4] ss:$16 sps:$4 sm:$0xff]   ;;  %v2278_v21 = vld [vmem:[#allocation15 + $0x68] ss:$16 sps:$4 sm:$0xff]   ;;  %v2281_v22 = vld [vmem:[#allocation15 + $0x8c] ss:$16 sps:$4 sm:$0xff]  }
  0x75   : > { %341 = vmatpush1.bf16.msra.mxu0 %v2251_v6  ;;  %382 = vmatpush1.bf16.msra.mxu1 %v2266_v13  ;;  %v2271_v23 = vld [vmem:[#allocation15 + $0xa0] ss:$16 sps:$4 sm:$0xff]   ;;  %v2273_v24 = vld [vmem:[#allocation15 + $0xc4] ss:$16 sps:$4 sm:$0xff]   ;;  %v2284_v25 = vld [vmem:[#allocation15 + $0x88] ss:$16 sps:$4 sm:$0xff]  }
  0x76   : > { %342 = vmatprep.subr.bf16.mxu0 %v2252_v7  ;;  %383 = vmatprep.subr.bf16.mxu1 %v2269_v16  ;;  %v2285_v26 = vld [vmem:[#allocation15 + $0xac] ss:$16 sps:$4 sm:$0xff]   ;;  %v2277_v27 = vld [vmem:[#allocation15 + $0xc0] ss:$16 sps:$4 sm:$0xff]   ;;  %v2279_v28 = vld [vmem:[#allocation15 + $0xe4] ss:$16 sps:$4 sm:$0xff]  }
  0x77   : > { %v2287_v29 = vld [vmem:[#allocation15 + $0xa8] ss:$16 sps:$4 sm:$0xff]   ;;  %v2288_v30 = vld [vmem:[#allocation15 + $0xcc] ss:$16 sps:$4 sm:$0xff]   ;;  %v2283_v31 = vld [vmem:[#allocation15 + $0xe0] ss:$16 sps:$4 sm:$0xff]  }
  0x78   : > { %v2290_v32 = vld [vmem:[#allocation15 + $0xc8] ss:$16 sps:$4 sm:$0xff]   ;;  %v2291_v33 = vld [vmem:[#allocation15 + $0xec] ss:$16 sps:$4 sm:$0xff]   ;;  %s140_s15 = scalar_lea.vmem [#allocation12], %s2153_s6  ;;  %s1975_s16 = sshll.u32 %s2744_s0, 3 }
  0x79   : > { %343 = vmatpush1.bf16.msra.mxu0 %v2254_v10  ;;  %384 = vmatpush1.bf16.msra.mxu1 %v2272_v17  ;;  %v2293_v35 = vld [vmem:[#allocation15 + $0xe8] ss:$16 sps:$4 sm:$0xff]   ;;  %v141_v36 = vld [vmem:[%s140_s15] sm:$0xff]  ;;  %v143_v52 = vld [vmem:[%s140_s15 + $0x10] sm:$0xff]  ;;  %s448_s22 = scalar_lea.vmem [#allocation8], %s1975_s16  ;;  %s134_s0 = sadd.s32 1, %s2744_s0  }
  0x7a   : > { %344 = vmatprep.subr.bf16.mxu0 %v2255_v11  ;;  %385 = vmatprep.subr.bf16.mxu1 %v2275_v18  ;;  %v142_v37 = vld [vmem:[%s140_s15 + $0x8] sm:$0xff]  ;;  %v144_v46 = vld [vmem:[%s140_s15 + $0x18] sm:$0xff]  ;;  %p131_p6 = scmp.ge.s32.totalorder %s134_s0, 8  }
  0x7b   :  { %v2310_v5 = vld [vmem:[#allocation17 + $0x4] ss:$16 sps:$4 sm:$0xff] (%p131_p6)   ;;  %v2312_v6 = vld [vmem:[#allocation17 + $0xc] ss:$16 sps:$4 sm:$0xff] (%p131_p6)   ;;  %v2781_v7 = vmov (%p131_p6), 0  }
  0x7c   :  { %v2314_v8 = vld [vmem:[#allocation17] ss:$16 sps:$4 sm:$0xff] (%p131_p6)   ;;  %v2315_v9 = vld [vmem:[#allocation17 + $0x8] ss:$16 sps:$4 sm:$0xff] (%p131_p6)   ;;  %v2316_v10 = vld [vmem:[#allocation17 + $0x24] ss:$16 sps:$4 sm:$0xff] (%p131_p6)  }
  0x7d   : > { %345 = vmatpush1.bf16.msra.mxu0 %v2259_v14  ;;  %386 = vmatpush1.bf16.msra.mxu1 %v2278_v21  ;;  %v2318_v11 = vld [vmem:[#allocation17 + $0x2c] ss:$16 sps:$4 sm:$0xff] (%p131_p6)   ;;  %v2320_v12 = vld [vmem:[#allocation17 + $0x20] ss:$16 sps:$4 sm:$0xff] (%p131_p6)   ;;  %v2321_v13 = vld [vmem:[#allocation17 + $0x28] ss:$16 sps:$4 sm:$0xff] (%p131_p6)  }
  0x7e   : > { %346 = vmatprep.subr.bf16.mxu0 %v2261_v15  ;;  %387 = vmatprep.subr.bf16.mxu1 %v2281_v22  ;;  %v2322_v14 = vld [vmem:[#allocation17 + $0x44] ss:$16 sps:$4 sm:$0xff] (%p131_p6)   ;;  %v2326_v15 = vld [vmem:[#allocation17 + $0x40] ss:$16 sps:$4 sm:$0xff] (%p131_p6)   ;;  %v2327_v16 = vld [vmem:[#allocation17 + $0x48] ss:$16 sps:$4 sm:$0xff] (%p131_p6)  }
  0x7f   :  { %v2328_v17 = vld [vmem:[#allocation17 + $0x64] ss:$16 sps:$4 sm:$0xff] (%p131_p6)   ;;  %v2330_v18 = vld [vmem:[#allocation17 + $0x6c] ss:$16 sps:$4 sm:$0xff] (%p131_p6)  }
  0x80   :  { %v2334_v21 = vld [vmem:[#allocation17 + $0x84] ss:$16 sps:$4 sm:$0xff] (%p131_p6)   ;;  %v2336_v22 = vld [vmem:[#allocation17 + $0x8c] ss:$16 sps:$4 sm:$0xff] (%p131_p6)  }
  0x81   : > { %347 = vmatpush1.bf16.msra.mxu0 %v2265_v19  ;;  %388 = vmatpush1.bf16.msra.mxu1 %v2284_v25  ;;  %v2332_v19 = vld [vmem:[#allocation17 + $0x60] ss:$16 sps:$4 sm:$0xff] (%p131_p6)   ;;  %v2340_v25 = vld [vmem:[#allocation17 + $0xa4] ss:$16 sps:$4 sm:$0xff] (%p131_p6)  }
  0x82   : > { %348 = vmatprep.subr.bf16.mxu0 %v2267_v20  ;;  %389 = vmatprep.subr.bf16.mxu1 %v2285_v26  ;;  %v2333_v20 = vld [vmem:[#allocation17 + $0x68] ss:$16 sps:$4 sm:$0xff] (%p131_p6)   ;;  %v2342_v26 = vld [vmem:[#allocation17 + $0xac] ss:$16 sps:$4 sm:$0xff] (%p131_p6)  }
  0x85   : > { %349 = vmatpush1.bf16.msra.mxu0 %v2271_v23  ;;  %390 = vmatpush1.bf16.msra.mxu1 %v2287_v29  ;;  %v2338_v23 = vld [vmem:[#allocation17 + $0x80] ss:$16 sps:$4 sm:$0xff] (%p131_p6)   ;;  %v2346_v29 = vld [vmem:[#allocation17 + $0xc4] ss:$16 sps:$4 sm:$0xff] (%p131_p6)  }
  0x86   : > { %350 = vmatprep.subr.bf16.mxu0 %v2273_v24  ;;  %391 = vmatprep.subr.bf16.mxu1 %v2288_v30  ;;  %v2339_v24 = vld [vmem:[#allocation17 + $0x88] ss:$16 sps:$4 sm:$0xff] (%p131_p6)   ;;  %v2348_v30 = vld [vmem:[#allocation17 + $0xcc] ss:$16 sps:$4 sm:$0xff] (%p131_p6)  }
  0x89   : > { %351 = vmatpush1.bf16.msra.mxu0 %v2277_v27  ;;  %392 = vmatpush1.bf16.msra.mxu1 %v2290_v32  ;;  %v2344_v27 = vld [vmem:[#allocation17 + $0xa0] ss:$16 sps:$4 sm:$0xff] (%p131_p6)   ;;  %v2351_v32 = vld [vmem:[#allocation17 + $0xc8] ss:$16 sps:$4 sm:$0xff] (%p131_p6)  }
  0x8a   : > { %352 = vmatprep.subr.bf16.mxu0 %v2279_v28  ;;  %393 = vmatprep.subr.bf16.mxu1 %v2291_v33  ;;  %v2345_v28 = vld [vmem:[#allocation17 + $0xa8] ss:$16 sps:$4 sm:$0xff] (%p131_p6)   ;;  %v2352_v33 = vld [vmem:[#allocation17 + $0xe4] ss:$16 sps:$4 sm:$0xff] (%p131_p6)  }
  0x8d   : > { %353 = vmatpush1.bf16.msra.mxu0 %v2283_v31  ;;  %394 = vmatpush1.bf16.msra.mxu1 %v2293_v35  ;;  %v2350_v31 = vld [vmem:[#allocation17 + $0xc0] ss:$16 sps:$4 sm:$0xff] (%p131_p6)  }
  0x8e   :  { %676 = vmatprep.subr.bf16.mxu0 (%p131_p6), %v2310_v5  ;;  %749 = vmatprep.subr.bf16.mxu1 (%p131_p6), %v2312_v6  ;;  %v2356_v35 = vld [vmem:[#allocation17 + $0xe0] ss:$16 sps:$4 sm:$0xff] (%p131_p6)  }
  0x90   : > { %371 = vmatmul.mubr.bf16.vlgmr.msra.gmra.mrb[0].mxu0 %v145_v34  ;;  %412 = vmatmul.mubr.bf16.vlgmr.msra.gmra.mrb[0].mxu1 %v145_v34  ;;  %v2354_v34 = vld [vmem:[#allocation17 + $0xec] ss:$16 sps:$4 sm:$0xff] (%p131_p6)  }
  0x91   :  { %708 = vmatprep.mubr.bf16.mxu0 (%p131_p6), %v2781_v7  ;;  %781 = vmatprep.mubr.bf16.mxu1 (%p131_p6), %v2781_v7 }
  0x92   :  { %677 = vmatpush1.bf16.msra.mxu0 (%p131_p6), %v2314_v8  ;;  %750 = vmatpush1.bf16.msra.mxu1 (%p131_p6), %v2315_v9 }
  0x93   :  { %678 = vmatprep.subr.bf16.mxu0 (%p131_p6), %v2316_v10  ;;  %751 = vmatprep.subr.bf16.mxu1 (%p131_p6), %v2318_v11 }
  0x96   :  { %679 = vmatpush1.bf16.msra.mxu0 (%p131_p6), %v2320_v12  ;;  %752 = vmatpush1.bf16.msra.mxu1 (%p131_p6), %v2321_v13 }
  0x97   :  { %680 = vmatprep.subr.bf16.mxu0 (%p131_p6), %v2322_v14 }
  0x9a   :  { %681 = vmatpush1.bf16.msra.mxu0 (%p131_p6), %v2326_v15 }
  0x9b   :  { %682 = vmatprep.subr.bf16.mxu0 (%p131_p6), %v2328_v17 }
  0x9e   :  { %683 = vmatpush1.bf16.msra.mxu0 (%p131_p6), %v2332_v19 }
  0x9f   :  { %684 = vmatprep.subr.bf16.mxu0 (%p131_p6), %v2334_v21 }
  0xa2   :  { %685 = vmatpush1.bf16.msra.mxu0 (%p131_p6), %v2338_v23 }
  0xa3   :  { %686 = vmatprep.subr.bf16.mxu0 (%p131_p6), %v2340_v25 }
  0xa6   :  { %687 = vmatpush1.bf16.msra.mxu0 (%p131_p6), %v2344_v27 }
  0xa7   :  { %688 = vmatprep.subr.bf16.mxu0 (%p131_p6), %v2346_v29 }
  0xaa   :  { %689 = vmatpush1.bf16.msra.mxu0 (%p131_p6), %v2350_v31 }
  0xab   :  { %690 = vmatprep.subr.bf16.mxu0 (%p131_p6), %v2352_v33 }
  0xae   :  { %691 = vmatpush1.bf16.msra.mxu0 (%p131_p6), %v2356_v35 }
 0x163   : > { %v372_v38 = vpop.f32.mrb[0].mxu0  ;;  %v413_v47 = vpop.f32.mrb[0].mxu1 }
 0x164   : > { %v420_v39 = vadd.f32 %v372_v38, %v141_v36  ;;  %v374_v40 = vpop.f32.mrb[1].mxu0  ;;  %v415_v48 = vpop.f32.mrb[1].mxu1  ;;  %v422_v54 = vadd.f32 %v413_v47, %v143_v52  ;;  %v2357_v36 = vld [vmem:[#allocation17 + $0xe8] ss:$16 sps:$4 sm:$0xff] (%p131_p6)  }
 0x165   : > { %v421_v41 = vadd.f32 %v374_v40, %v142_v37  ;;  %v376_v42 = vpop.f32.mrb[2].mxu0  ;;  %v423_v49 = vadd.f32 %v415_v48, %v144_v46  ;;  %v417_v50 = vpop.f32.mrb[2].mxu1 }
 0x166   : > { %v2010_v43 = vmul.f32 -1.442695, %v420_v39  ;;  %v377_v44 = vpop.f32.mrb[3].mxu0  ;;  %v418_v51 = vpop.f32.mrb[3].mxu1 }
 0x167   : > { %v2011_v45 = vmul.f32 -1.442695, %v421_v41  ;;  %v2012_v53 = vmul.f32 -1.442695, %v423_v49  ;;  %v496_v49 = vlaneseq (%p131_p6) }
 0x168   : > { %2294 = vpow2.f32 %v2010_v43 }
 0x169   : > { %2296 = vpow2.f32 %v2011_v45  ;;  %v2954_v50 = vshrl.u32 (%p131_p6), %v496_v49, 7 }
 0x16a   : > { %2298 = vpow2.f32 %v2012_v53  ;;  %v494_v53 = vld [vmem:[%s3146_s4] sm:$0xf] (%p131_p6)  ;;  %s3015_s4 = smov (%p131_p6), 0  }
 0x16b   : > { %2300 = vtanh.f32 %v422_v54  ;;  %v498_v51 = vsub.s32 (%p131_p6), 0, %v2954_v50  ;;  %v506_v52 = vsub.s32 (%p131_p6), 2, %v2954_v50  ;;  %v502_v54 = vsub.s32 (%p131_p6), 1, %v2954_v50 }
 0x172   : > { %v2295_v55 = vpop.eup %2294 }
 0x173   : > { %v2297_v56 = vpop.eup %2296  ;;  %v427_v57 = vadd.f32 1.0, %v2295_v55  ;;  %v510_v55 = vsub.s32 (%p131_p6), 3, %v2954_v50 }
 0x174   : > { %v433_v58 = vadd.f32 1.0, %v2297_v56  ;;  %v2299_v59 = vpop.eup %2298  ;;  %v2965_v56 = vrot.slane (%p131_p6), %v494_v53, %v498_v51 }
 0x175   : > { %2302 = vrcp.f32 %v427_v57  ;;  %v2301_v60 = vpop.eup %2300  ;;  %v440_v62 = vadd.f32 1.0, %v2299_v59  ;;  %v2969_v57 = vrot.slane (%p131_p6), %v494_v53, %v506_v52  ;;  %v2977_v59 = vrot.slane (%p131_p6), %v494_v53, %v510_v55 }
 0x176   : > { %2304 = vrcp.f32 %v433_v58  ;;  %v2973_v58 = vrot.slane (%p131_p6), %v494_v53, %v502_v54 }
 0x177   : > { %2306 = vrcp.f32 %v440_v62 }
 0x17f   : > { %v2303_v61 = vpop.eup %2302 }
 0x180   : > { %v2305_v63 = vpop.eup %2304  ;;  %v444_v1 = vmul.f32 %v2303_v61, %v2301_v60 }
 0x181   : > { %v443_v2 = vmul.f32 %v2736_v0, %v2305_v63  ;;  %v2307_v3 = vpop.eup %2306 }
 0x183   : > { %v445_v0 = vadd.f32 %v444_v1, %v443_v2  }
 0x185   : > { %2308 = vtanh.f32 %v445_v0  ;;  %v2324_v0 = vld [vmem:[#allocation17 + $0x4c] ss:$16 sps:$4 sm:$0xff] (%p131_p6)  }
 0x186   :  { %753 = vmatprep.subr.bf16.mxu1 (%p131_p6), %v2324_v0 }
 0x187   :  { %754 = vmatpush1.bf16.msra.mxu1 (%p131_p6), %v2327_v16 }
 0x188   :  { %755 = vmatprep.subr.bf16.mxu1 (%p131_p6), %v2330_v18 }
 0x18b   :  { %756 = vmatpush1.bf16.msra.mxu1 (%p131_p6), %v2333_v20 }
 0x18c   :  { %133 = sbr.rel (!%p131_p6) target bundleno = 110 (0x6e), region = 107  ;;  %757 = vmatprep.subr.bf16.mxu1 (%p131_p6), %v2336_v22 }
 0x18f   : > { %v2309_v4 = vpop.eup %2308  ;;  %758 = vmatpush1.bf16.msra.mxu1 (%p131_p6), %v2339_v24 }
 0x190   : > { %v447_v1 = vmul.f32 %v2309_v4, %v2307_v3   ;;  %759 = vmatprep.subr.bf16.mxu1 (%p131_p6), %v2342_v26 }
 0x192   : > { %449 = vst [vmem:[%s448_s22] sm:$0xff] %v447_v1 }
 0x193   :  { %760 = vmatpush1.bf16.msra.mxu1 %v2345_v28 }
 0x194   :  { %761 = vmatprep.subr.bf16.mxu1 %v2348_v30 }
 0x197   :  { %762 = vmatpush1.bf16.msra.mxu1 %v2351_v32 }
 0x198   :  { %763 = vmatprep.subr.bf16.mxu1 %v2354_v34 }
 0x199   :  { %v450_v37 = vld [vmem:[#allocation8] sm:$0xff]  ;;  %v451_v38 = vld [vmem:[#allocation8 + $0x8] sm:$0xff]  ;;  %v452_v40 = vld [vmem:[#allocation8 + $0x10] sm:$0xff] }
 0x19a   :  { %v458_v39 = vpack.c.bf16 %v451_v38, %v450_v37  ;;  %v453_v41 = vld [vmem:[#allocation8 + $0x18] sm:$0xff]  ;;  %v454_v43 = vld [vmem:[#allocation8 + $0x20] sm:$0xff]  ;;  %v455_v44 = vld [vmem:[#allocation8 + $0x28] sm:$0xff] }
 0x19b   :  { %764 = vmatpush1.bf16.msra.mxu1 %v2357_v36  ;;  %v459_v42 = vpack.c.bf16 %v453_v41, %v452_v40  ;;  %v460_v45 = vpack.c.bf16 %v455_v44, %v454_v43  ;;  %v456_v46 = vld [vmem:[#allocation8 + $0x30] sm:$0xff]  ;;  %v457_v47 = vld [vmem:[#allocation8 + $0x38] sm:$0xff] }
 0x19c   :  { %709 = vmatmul.mubr.bf16.vlgmr.msra.gmra.mrb[0].mxu0 %v458_v39  ;;  %v461_v48 = vpack.c.bf16 %v457_v47, %v456_v46 }
 0x19d   :  { %718 = vmatprep.mubr.bf16.mxu0 %v2781_v7 }
 0x19e   :  { %782 = vmatmul.mubr.bf16.vlgmr.msra.gmra.mrb[0].mxu1 %v458_v39 }
 0x19f   :  { %791 = vmatprep.mubr.bf16.mxu1 %v2781_v7 }
 0x1a4   :  { %719 = vmatmul.mubr.bf16.gmra.mrb[4].mxu0 %v459_v42 }
 0x1a5   :  { %728 = vmatprep.mubr.bf16.mxu0 %v2781_v7 }
 0x1a6   :  { %792 = vmatmul.mubr.bf16.gmra.mrb[4].mxu1 %v459_v42 }
 0x1a7   :  { %801 = vmatprep.mubr.bf16.mxu1 %v2781_v7 }
 0x1ac   :  { %729 = vmatmul.mubr.bf16.gmra.mrb[8].mxu0 %v460_v45 }
 0x1ad   :  { %738 = vmatprep.mubr.bf16.mxu0 %v2781_v7 }
 0x1ae   :  { %802 = vmatmul.mubr.bf16.gmra.mrb[8].mxu1 %v460_v45 }
 0x1af   :  { %811 = vmatprep.mubr.bf16.mxu1 %v2781_v7 }
 0x1b4   :  { %739 = vmatmul.mubr.bf16.gmra.mrb[12].mxu0 %v461_v48 }
 0x1b6   :  { %812 = vmatmul.mubr.bf16.gmra.mrb[12].mxu1 %v461_v48 }
 0x26f   :  { %v710_v60 = vpop.f32.mrb[0].mxu0 }
 0x270   :  { %v711_v62 = vadd.f32 %v710_v60, %v2965_v56  ;;  %v712_v1 = vpop.f32.mrb[1].mxu0 }
 0x271   :  { %v783_v61 = vpop.f32.mrb[0].mxu1  ;;  %v713_v3 = vadd.f32 %v712_v1, %v2973_v58  ;;  %v714_v5 = vpop.f32.mrb[2].mxu0 }
 0x272   :  { %v784_v63 = vadd.f32 %v783_v61, %v2969_v57  ;;  %v785_v2 = vpop.f32.mrb[1].mxu1  ;;  %822 = vst [vmem:[#allocation9] sm:$0xff] %v711_v62  ;;  %v715_v8 = vadd.f32 %v714_v5, %v2965_v56  ;;  %v716_v10 = vpop.f32.mrb[3].mxu0 }
 0x273   :  { %v786_v4 = vadd.f32 %v785_v2, %v2977_v59  ;;  %v787_v6 = vpop.f32.mrb[2].mxu1  ;;  %823 = vst [vmem:[#allocation9 + $0x8] sm:$0xff] %v713_v3  ;;  %v717_v12 = vadd.f32 %v716_v10, %v2973_v58 }
 0x274   :  { %824 = vst [vmem:[#allocation9 + $0x10] sm:$0xff] %v784_v63  ;;  %v788_v9 = vadd.f32 %v787_v6, %v2969_v57  ;;  %v789_v11 = vpop.f32.mrb[3].mxu1  ;;  %826 = vst [vmem:[#allocation9 + $0x20] sm:$0xff] %v715_v8  ;;  %v3011_v8 = vmov 0.0  }
 0x275   :  { %825 = vst [vmem:[#allocation9 + $0x18] sm:$0xff] %v786_v4  ;;  %v790_v13 = vadd.f32 %v789_v11, %v2977_v59  ;;  %827 = vst [vmem:[#allocation9 + $0x28] sm:$0xff] %v717_v12 }
 0x276   :  { %828 = vst [vmem:[#allocation9 + $0x30] sm:$0xff] %v788_v9  ;;  %v3013_v9 = vmov 0.0  }
 0x277   :  { %829 = vst [vmem:[#allocation9 + $0x38] sm:$0xff] %v790_v13  ;;  %v720_v14 = vpop.f32.mrb[4].mxu0 }
 0x278   :  { %v721_v15 = vadd.f32 %v720_v14, %v2965_v56  ;;  %v722_v17 = vpop.f32.mrb[5].mxu0 }
 0x279   :  { %v793_v0 = vpop.f32.mrb[4].mxu1  ;;  %v723_v19 = vadd.f32 %v722_v17, %v2973_v58  ;;  %v724_v21 = vpop.f32.mrb[6].mxu0 }
 0x27a   :  { %v794_v16 = vadd.f32 %v793_v0, %v2969_v57  ;;  %v795_v18 = vpop.f32.mrb[5].mxu1  ;;  %830 = vst [vmem:[#allocation9 + $0x40] sm:$0xff] %v721_v15  ;;  %v725_v23 = vadd.f32 %v724_v21, %v2965_v56  ;;  %v726_v25 = vpop.f32.mrb[7].mxu0 }
 0x27b   :  { %v796_v20 = vadd.f32 %v795_v18, %v2977_v59  ;;  %v797_v22 = vpop.f32.mrb[6].mxu1  ;;  %831 = vst [vmem:[#allocation9 + $0x48] sm:$0xff] %v723_v19  ;;  %v727_v27 = vadd.f32 %v726_v25, %v2973_v58 }
 0x27c   :  { %832 = vst [vmem:[#allocation9 + $0x50] sm:$0xff] %v794_v16  ;;  %v798_v24 = vadd.f32 %v797_v22, %v2969_v57  ;;  %v799_v26 = vpop.f32.mrb[7].mxu1  ;;  %834 = vst [vmem:[#allocation9 + $0x60] sm:$0xff] %v725_v23 }
 0x27d   :  { %833 = vst [vmem:[#allocation9 + $0x58] sm:$0xff] %v796_v20  ;;  %v800_v28 = vadd.f32 %v799_v26, %v2977_v59  ;;  %835 = vst [vmem:[#allocation9 + $0x68] sm:$0xff] %v727_v27 }
 0x27e   :  { %836 = vst [vmem:[#allocation9 + $0x70] sm:$0xff] %v798_v24 }
 0x27f   :  { %837 = vst [vmem:[#allocation9 + $0x78] sm:$0xff] %v800_v28  ;;  %v730_v29 = vpop.f32.mrb[8].mxu0 }
 0x280   :  { %v731_v31 = vadd.f32 %v730_v29, %v2965_v56  ;;  %v732_v33 = vpop.f32.mrb[9].mxu0 }
 0x281   :  { %v803_v30 = vpop.f32.mrb[8].mxu1  ;;  %v733_v35 = vadd.f32 %v732_v33, %v2973_v58  ;;  %v734_v37 = vpop.f32.mrb[10].mxu0 }
 0x282   :  { %v804_v32 = vadd.f32 %v803_v30, %v2969_v57  ;;  %v805_v34 = vpop.f32.mrb[9].mxu1  ;;  %838 = vst [vmem:[#allocation9 + $0x80] sm:$0xff] %v731_v31  ;;  %v735_v39 = vadd.f32 %v734_v37, %v2965_v56  ;;  %v736_v41 = vpop.f32.mrb[11].mxu0 }
 0x283   :  { %v806_v36 = vadd.f32 %v805_v34, %v2977_v59  ;;  %v807_v38 = vpop.f32.mrb[10].mxu1  ;;  %839 = vst [vmem:[#allocation9 + $0x88] sm:$0xff] %v733_v35  ;;  %v737_v43 = vadd.f32 %v736_v41, %v2973_v58 }
 0x284   :  { %840 = vst [vmem:[#allocation9 + $0x90] sm:$0xff] %v804_v32  ;;  %v808_v40 = vadd.f32 %v807_v38, %v2969_v57  ;;  %v809_v42 = vpop.f32.mrb[11].mxu1  ;;  %842 = vst [vmem:[#allocation9 + $0xa0] sm:$0xff] %v735_v39 }
 0x285   :  { %841 = vst [vmem:[#allocation9 + $0x98] sm:$0xff] %v806_v36  ;;  %v810_v44 = vadd.f32 %v809_v42, %v2977_v59  ;;  %843 = vst [vmem:[#allocation9 + $0xa8] sm:$0xff] %v737_v43 }
 0x286   :  { %844 = vst [vmem:[#allocation9 + $0xb0] sm:$0xff] %v808_v40 }
 0x287   :  { %845 = vst [vmem:[#allocation9 + $0xb8] sm:$0xff] %v810_v44  ;;  %v740_v45 = vpop.f32.mrb[12].mxu0 }
 0x288   :  { %v741_v47 = vadd.f32 %v740_v45, %v2965_v56  ;;  %v742_v49 = vpop.f32.mrb[13].mxu0 }
 0x289   :  { %v813_v46 = vpop.f32.mrb[12].mxu1  ;;  %v743_v60 = vadd.f32 %v742_v49, %v2973_v58  ;;  %v744_v62 = vpop.f32.mrb[14].mxu0 }
 0x28a   :  { %v814_v48 = vadd.f32 %v813_v46, %v2969_v57  ;;  %v815_v53 = vpop.f32.mrb[13].mxu1  ;;  %846 = vst [vmem:[#allocation9 + $0xc0] sm:$0xff] %v741_v47  ;;  %v745_v1 = vadd.f32 %v744_v62, %v2965_v56  ;;  %v746_v3 = vpop.f32.mrb[15].mxu0 }
 0x28b   :  { %v816_v61 = vadd.f32 %v815_v53, %v2977_v59  ;;  %v817_v63 = vpop.f32.mrb[14].mxu1  ;;  %847 = vst [vmem:[#allocation9 + $0xc8] sm:$0xff] %v743_v60  ;;  %v747_v5 = vadd.f32 %v746_v3, %v2973_v58 }
 0x28c   :  { %848 = vst [vmem:[#allocation9 + $0xd0] sm:$0xff] %v814_v48  ;;  %v818_v2 = vadd.f32 %v817_v63, %v2969_v57  ;;  %v819_v4 = vpop.f32.mrb[15].mxu1  ;;  %850 = vst [vmem:[#allocation9 + $0xe0] sm:$0xff] %v745_v1 }
 0x28d   :  { %849 = vst [vmem:[#allocation9 + $0xd8] sm:$0xff] %v816_v61  ;;  %v820_v6 = vadd.f32 %v819_v4, %v2977_v59  ;;  %851 = vst [vmem:[#allocation9 + $0xe8] sm:$0xff] %v747_v5 }
 0x28e   :  { %852 = vst [vmem:[#allocation9 + $0xf0] sm:$0xff] %v818_v2 }
 0x28f   :  { %853 = vst [vmem:[#allocation9 + $0xf8] sm:$0xff] %v820_v6 }
 0x290 LB: > { %v2358_v56 = vld [vmem:[#allocation18 + $0x4] ss:$16 sps:$4 sm:$0xff]   ;;  %v2360_v57 = vld [vmem:[#allocation18] ss:$16 sps:$4 sm:$0xff]   ;;  %v2782_v58 = vmov 0   ;;  %v872_v37 = vpack.c.bf16 %v2752_v9, %v2752_v9  ;;  %s2045_s14 = sshll.u32 %s2756_s4, 3  ;;  %s2756_s4 = sphi %s3015_s4, %s859_s4   ;;  %v2752_v9 = vphi %v3013_v9, %v1174_v9   ;;  %v2748_v8 = vphi %v3011_v8, %v1172_v8  }
 0x291   : > { %1097 = vmatprep.mubr.bf16.mxu0 %v2782_v58  ;;  %1138 = vmatprep.mubr.bf16.mxu1 %v2782_v58  ;;  %v2361_v59 = vld [vmem:[#allocation18 + $0x24] ss:$16 sps:$4 sm:$0xff]   ;;  %v2363_v10 = vld [vmem:[#allocation18 + $0x20] ss:$16 sps:$4 sm:$0xff]   ;;  %v2369_v12 = vld [vmem:[#allocation18 + $0xc] ss:$16 sps:$4 sm:$0xff]  }
 0x292   : > { %1065 = vmatprep.subr.bf16.mxu0 %v2358_v56  ;;  %v2364_v11 = vld [vmem:[#allocation18 + $0x44] ss:$16 sps:$4 sm:$0xff]   ;;  %v2372_v13 = vld [vmem:[#allocation18 + $0x8] ss:$16 sps:$4 sm:$0xff]   ;;  %v2366_v14 = vld [vmem:[#allocation18 + $0x40] ss:$16 sps:$4 sm:$0xff]   ;;  %1106 = vmatprep.subr.bf16.mxu1 %v2369_v12 }
 0x293   : > { %1066 = vmatpush1.bf16.msra.mxu0 %v2360_v57  ;;  %v2367_v0 = vld [vmem:[#allocation18 + $0x64] ss:$16 sps:$4 sm:$0xff]   ;;  %1107 = vmatpush1.bf16.msra.mxu1 %v2372_v13  ;;  %v2375_v15 = vld [vmem:[#allocation18 + $0x2c] ss:$16 sps:$4 sm:$0xff]   ;;  %v2378_v16 = vld [vmem:[#allocation18 + $0x28] ss:$16 sps:$4 sm:$0xff]  }
 0x294   : > { %1067 = vmatprep.subr.bf16.mxu0 %v2361_v59  ;;  %1108 = vmatprep.subr.bf16.mxu1 %v2375_v15  ;;  %v2371_v17 = vld [vmem:[#allocation18 + $0x60] ss:$16 sps:$4 sm:$0xff]   ;;  %v2373_v18 = vld [vmem:[#allocation18 + $0x84] ss:$16 sps:$4 sm:$0xff]   ;;  %v2381_v19 = vld [vmem:[#allocation18 + $0x4c] ss:$16 sps:$4 sm:$0xff]  }
 0x295   : > { %v2384_v20 = vld [vmem:[#allocation18 + $0x48] ss:$16 sps:$4 sm:$0xff]   ;;  %v2387_v21 = vld [vmem:[#allocation18 + $0x6c] ss:$16 sps:$4 sm:$0xff]   ;;  %v2377_v22 = vld [vmem:[#allocation18 + $0x80] ss:$16 sps:$4 sm:$0xff]  }
 0x296   : > { %v2379_v23 = vld [vmem:[#allocation18 + $0xa4] ss:$16 sps:$4 sm:$0xff]   ;;  %v2390_v24 = vld [vmem:[#allocation18 + $0x68] ss:$16 sps:$4 sm:$0xff]   ;;  %v2393_v25 = vld [vmem:[#allocation18 + $0x8c] ss:$16 sps:$4 sm:$0xff]  }
 0x297   : > { %1068 = vmatpush1.bf16.msra.mxu0 %v2363_v10  ;;  %1109 = vmatpush1.bf16.msra.mxu1 %v2378_v16  ;;  %v2383_v26 = vld [vmem:[#allocation18 + $0xa0] ss:$16 sps:$4 sm:$0xff]   ;;  %v2385_v27 = vld [vmem:[#allocation18 + $0xc4] ss:$16 sps:$4 sm:$0xff]   ;;  %v2396_v28 = vld [vmem:[#allocation18 + $0x88] ss:$16 sps:$4 sm:$0xff]  }
 0x298   : > { %1069 = vmatprep.subr.bf16.mxu0 %v2364_v11  ;;  %1110 = vmatprep.subr.bf16.mxu1 %v2381_v19  ;;  %v2397_v29 = vld [vmem:[#allocation18 + $0xac] ss:$16 sps:$4 sm:$0xff]   ;;  %v2389_v30 = vld [vmem:[#allocation18 + $0xc0] ss:$16 sps:$4 sm:$0xff]   ;;  %v2391_v31 = vld [vmem:[#allocation18 + $0xe4] ss:$16 sps:$4 sm:$0xff]  }
 0x299   : > { %v2399_v32 = vld [vmem:[#allocation18 + $0xa8] ss:$16 sps:$4 sm:$0xff]   ;;  %v2400_v33 = vld [vmem:[#allocation18 + $0xcc] ss:$16 sps:$4 sm:$0xff]   ;;  %v2395_v34 = vld [vmem:[#allocation18 + $0xe0] ss:$16 sps:$4 sm:$0xff]  }
 0x29a   : > { %v2402_v35 = vld [vmem:[#allocation18 + $0xc8] ss:$16 sps:$4 sm:$0xff]   ;;  %v2403_v36 = vld [vmem:[#allocation18 + $0xec] ss:$16 sps:$4 sm:$0xff]   ;;  %s863_s17 = sshra.s32 %s2045_s14, 3  ;;  %s1175_s3 = scalar_lea.vmem [#allocation10], %s2045_s14 }
 0x29b   : > { %1070 = vmatpush1.bf16.msra.mxu0 %v2366_v14  ;;  %1111 = vmatpush1.bf16.msra.mxu1 %v2384_v20  ;;  %v2405_v38 = vld [vmem:[#allocation18 + $0xe8] ss:$16 sps:$4 sm:$0xff]   ;;  %s2154_s18 = sshll.u32 %s863_s17, 5  ;;  %s859_s4 = sadd.s32 1, %s2756_s4  }
 0x29c   : > { %1071 = vmatprep.subr.bf16.mxu0 %v2367_v0  ;;  %1112 = vmatprep.subr.bf16.mxu1 %v2387_v21  ;;  %s867_s19 = scalar_lea.vmem [#allocation9], %s2154_s18  ;;  %p856_p7 = scmp.ge.s32.totalorder %s859_s4, 8  }
 0x29d   : > { %v868_v39 = vld [vmem:[%s867_s19] sm:$0xff]  ;;  %v869_v40 = vld [vmem:[%s867_s19 + $0x8] sm:$0xff]  ;;  %v871_v49 = vld [vmem:[%s867_s19 + $0x18] sm:$0xff] }
 0x29e   : > { %v870_v1 = vld [vmem:[%s867_s19 + $0x10] sm:$0xff]  ;;  %v2424_v15 = vld [vmem:[#allocation20 + $0xc] ss:$16 sps:$4 sm:$0xff] (%p856_p7)   ;;  %v2433_v21 = vld [vmem:[#allocation20 + $0x28] ss:$16 sps:$4 sm:$0xff] (%p856_p7)  }
 0x29f   : > { %1072 = vmatpush1.bf16.msra.mxu0 %v2371_v17  ;;  %1113 = vmatpush1.bf16.msra.mxu1 %v2390_v24  ;;  %v2422_v0 = vld [vmem:[#allocation20 + $0x4] ss:$16 sps:$4 sm:$0xff] (%p856_p7)   ;;  %v2426_v16 = vld [vmem:[#allocation20] ss:$16 sps:$4 sm:$0xff] (%p856_p7)   ;;  %v2427_v17 = vld [vmem:[#allocation20 + $0x8] ss:$16 sps:$4 sm:$0xff] (%p856_p7)  }
 0x2a0   : > { %1073 = vmatprep.subr.bf16.mxu0 %v2373_v18  ;;  %1114 = vmatprep.subr.bf16.mxu1 %v2393_v25  ;;  %v2428_v18 = vld [vmem:[#allocation20 + $0x24] ss:$16 sps:$4 sm:$0xff] (%p856_p7)   ;;  %v2430_v19 = vld [vmem:[#allocation20 + $0x2c] ss:$16 sps:$4 sm:$0xff] (%p856_p7)   ;;  %v2432_v20 = vld [vmem:[#allocation20 + $0x20] ss:$16 sps:$4 sm:$0xff] (%p856_p7)  }
 0x2a1   :  { %v2439_v24 = vld [vmem:[#allocation20 + $0x48] ss:$16 sps:$4 sm:$0xff] (%p856_p7)   ;;  %v2440_v25 = vld [vmem:[#allocation20 + $0x64] ss:$16 sps:$4 sm:$0xff] (%p856_p7)  }
 0x2a3   : > { %1074 = vmatpush1.bf16.msra.mxu0 %v2377_v22  ;;  %1115 = vmatpush1.bf16.msra.mxu1 %v2396_v28  ;;  %v2434_v22 = vld [vmem:[#allocation20 + $0x44] ss:$16 sps:$4 sm:$0xff] (%p856_p7)   ;;  %v2445_v28 = vld [vmem:[#allocation20 + $0x68] ss:$16 sps:$4 sm:$0xff] (%p856_p7)  }
 0x2a4   : > { %1075 = vmatprep.subr.bf16.mxu0 %v2379_v23  ;;  %1116 = vmatprep.subr.bf16.mxu1 %v2397_v29  ;;  %v2436_v23 = vld [vmem:[#allocation20 + $0x4c] ss:$16 sps:$4 sm:$0xff] (%p856_p7)   ;;  %v2446_v29 = vld [vmem:[#allocation20 + $0x84] ss:$16 sps:$4 sm:$0xff] (%p856_p7)  }
 0x2a7   : > { %1076 = vmatpush1.bf16.msra.mxu0 %v2383_v26  ;;  %1117 = vmatpush1.bf16.msra.mxu1 %v2399_v32  ;;  %v2442_v26 = vld [vmem:[#allocation20 + $0x6c] ss:$16 sps:$4 sm:$0xff] (%p856_p7)   ;;  %v2451_v32 = vld [vmem:[#allocation20 + $0x88] ss:$16 sps:$4 sm:$0xff] (%p856_p7)  }
 0x2a8   : > { %1077 = vmatprep.subr.bf16.mxu0 %v2385_v27  ;;  %1118 = vmatprep.subr.bf16.mxu1 %v2400_v33  ;;  %v2444_v27 = vld [vmem:[#allocation20 + $0x60] ss:$16 sps:$4 sm:$0xff] (%p856_p7)   ;;  %v2452_v33 = vld [vmem:[#allocation20 + $0xa4] ss:$16 sps:$4 sm:$0xff] (%p856_p7)  }
 0x2ab   : > { %1078 = vmatpush1.bf16.msra.mxu0 %v2389_v30  ;;  %1119 = vmatpush1.bf16.msra.mxu1 %v2402_v35  ;;  %v2448_v30 = vld [vmem:[#allocation20 + $0x8c] ss:$16 sps:$4 sm:$0xff] (%p856_p7)   ;;  %v2456_v35 = vld [vmem:[#allocation20 + $0xa0] ss:$16 sps:$4 sm:$0xff] (%p856_p7)  }
 0x2ac   : > { %1079 = vmatprep.subr.bf16.mxu0 %v2391_v31  ;;  %1120 = vmatprep.subr.bf16.mxu1 %v2403_v36  ;;  %v2450_v31 = vld [vmem:[#allocation20 + $0x80] ss:$16 sps:$4 sm:$0xff] (%p856_p7)   ;;  %v2457_v36 = vld [vmem:[#allocation20 + $0xa8] ss:$16 sps:$4 sm:$0xff] (%p856_p7)  }
 0x2af   : > { %1080 = vmatpush1.bf16.msra.mxu0 %v2395_v34  ;;  %1121 = vmatpush1.bf16.msra.mxu1 %v2405_v38  ;;  %v2454_v34 = vld [vmem:[#allocation20 + $0xac] ss:$16 sps:$4 sm:$0xff] (%p856_p7)  }
 0x2b0   :  { %1403 = vmatprep.subr.bf16.mxu0 (%p856_p7), %v2422_v0  ;;  %1476 = vmatprep.subr.bf16.mxu1 (%p856_p7), %v2424_v15  ;;  %v2460_v38 = vld [vmem:[#allocation20 + $0xcc] ss:$16 sps:$4 sm:$0xff] (%p856_p7)  }
 0x2b2   : > { %1098 = vmatmul.mubr.bf16.vlgmr.msra.gmra.mrb[0].mxu0 %v872_v37  ;;  %1139 = vmatmul.mubr.bf16.vlgmr.msra.gmra.mrb[0].mxu1 %v872_v37  ;;  %v2458_v37 = vld [vmem:[#allocation20 + $0xc4] ss:$16 sps:$4 sm:$0xff] (%p856_p7)  }
 0x2b3   :  { %1435 = vmatprep.mubr.bf16.mxu0 (%p856_p7), %v2781_v7  ;;  %1508 = vmatprep.mubr.bf16.mxu1 (%p856_p7), %v2781_v7 }
 0x2b4   :  { %1404 = vmatpush1.bf16.msra.mxu0 (%p856_p7), %v2426_v16  ;;  %1477 = vmatpush1.bf16.msra.mxu1 (%p856_p7), %v2427_v17 }
 0x2b5   :  { %1405 = vmatprep.subr.bf16.mxu0 (%p856_p7), %v2428_v18  ;;  %1478 = vmatprep.subr.bf16.mxu1 (%p856_p7), %v2430_v19 }
 0x2b8   :  { %1406 = vmatpush1.bf16.msra.mxu0 (%p856_p7), %v2432_v20  ;;  %1479 = vmatpush1.bf16.msra.mxu1 (%p856_p7), %v2433_v21 }
 0x2b9   :  { %1407 = vmatprep.subr.bf16.mxu0 (%p856_p7), %v2434_v22  ;;  %1480 = vmatprep.subr.bf16.mxu1 (%p856_p7), %v2436_v23 }
 0x2bc   :  { %1481 = vmatpush1.bf16.msra.mxu1 (%p856_p7), %v2439_v24 }
 0x2bd   :  { %1482 = vmatprep.subr.bf16.mxu1 (%p856_p7), %v2442_v26 }
 0x2c0   :  { %1483 = vmatpush1.bf16.msra.mxu1 (%p856_p7), %v2445_v28 }
 0x2c1   :  { %1484 = vmatprep.subr.bf16.mxu1 (%p856_p7), %v2448_v30 }
 0x2c4   :  { %1485 = vmatpush1.bf16.msra.mxu1 (%p856_p7), %v2451_v32 }
 0x2c5   :  { %1486 = vmatprep.subr.bf16.mxu1 (%p856_p7), %v2454_v34 }
 0x2c8   :  { %1487 = vmatpush1.bf16.msra.mxu1 (%p856_p7), %v2457_v36 }
 0x2c9   :  { %1488 = vmatprep.subr.bf16.mxu1 (%p856_p7), %v2460_v38 }
 0x385   : > { %v1099_v41 = vpop.f32.mrb[0].mxu0  ;;  %v1140_v53 = vpop.f32.mrb[0].mxu1 }
 0x386   : > { %v1147_v42 = vadd.f32 %v1099_v41, %v868_v39  ;;  %v1101_v43 = vpop.f32.mrb[1].mxu0  ;;  %v1142_v60 = vpop.f32.mrb[1].mxu1  ;;  %v1149_v3 = vadd.f32 %v1140_v53, %v870_v1  ;;  %v2462_v39 = vld [vmem:[#allocation20 + $0xc0] ss:$16 sps:$4 sm:$0xff] (%p856_p7)   ;;  %v2464_v41 = vld [vmem:[#allocation20 + $0xe4] ss:$16 sps:$4 sm:$0xff] (%p856_p7)  }
 0x387   : > { %v1148_v44 = vadd.f32 %v1101_v43, %v869_v40  ;;  %v1103_v45 = vpop.f32.mrb[2].mxu0  ;;  %v1150_v61 = vadd.f32 %v1142_v60, %v871_v49  ;;  %v1144_v62 = vpop.f32.mrb[2].mxu1  ;;  %v2463_v40 = vld [vmem:[#allocation20 + $0xc8] ss:$16 sps:$4 sm:$0xff] (%p856_p7)   ;;  %v2468_v43 = vld [vmem:[#allocation20 + $0xe0] ss:$16 sps:$4 sm:$0xff] (%p856_p7)  }
 0x388   : > { %v2080_v46 = vmul.f32 -1.442695, %v1147_v42  ;;  %v1104_v47 = vpop.f32.mrb[3].mxu0  ;;  %v1145_v63 = vpop.f32.mrb[3].mxu1  ;;  %v2466_v42 = vld [vmem:[#allocation20 + $0xec] ss:$16 sps:$4 sm:$0xff] (%p856_p7)   ;;  %1489 = vmatpush1.bf16.msra.mxu1 (%p856_p7), %v2463_v40 }
 0x389   : > { %v2081_v48 = vmul.f32 -1.442695, %v1148_v44  ;;  %v2082_v2 = vmul.f32 -1.442695, %v1150_v61  ;;  %v2469_v44 = vld [vmem:[#allocation20 + $0xe8] ss:$16 sps:$4 sm:$0xff] (%p856_p7)   ;;  %1490 = vmatprep.subr.bf16.mxu1 (%p856_p7), %v2466_v42 }
 0x38a   : > { %2406 = vpow2.f32 %v2080_v46 }
 0x38b   : > { %2408 = vpow2.f32 %v2081_v48 }
 0x38c   : > { %2410 = vpow2.f32 %v2082_v2  ;;  %1491 = vmatpush1.bf16.msra.mxu1 (%p856_p7), %v2469_v44 }
 0x38d   : > { %2412 = vtanh.f32 %v1149_v3  ;;  %v1221_v3 = vld [vmem:[%s3149_s7] sm:$0xf] (%p856_p7)  ;;  %s3104_s7 = smov (%p856_p7), 0  }
 0x394   : > { %v2407_v4 = vpop.eup %2406 }
 0x395   : > { %v2409_v5 = vpop.eup %2408  ;;  %v1154_v6 = vadd.f32 1.0, %v2407_v4  ;;  %v3054_v4 = vrot.slane (%p856_p7), %v1221_v3, %v498_v51 }
 0x396   : > { %v1160_v9 = vadd.f32 1.0, %v2409_v5  ;;  %v2411_v56 = vpop.eup %2410  ;;  %v3058_v5 = vrot.slane (%p856_p7), %v1221_v3, %v506_v52 }
 0x397   : > { %2414 = vrcp.f32 %v1154_v6  ;;  %v2413_v57 = vpop.eup %2412  ;;  %v1167_v59 = vadd.f32 1.0, %v2411_v56  ;;  %v3066_v6 = vrot.slane (%p856_p7), %v1221_v3, %v510_v55 }
 0x398   : > { %2416 = vrcp.f32 %v1160_v9 }
 0x399   : > { %2418 = vrcp.f32 %v1167_v59 }
 0x3a1   : > { %v2415_v58 = vpop.eup %2414 }
 0x3a2   : > { %v2417_v10 = vpop.eup %2416  ;;  %v1171_v11 = vmul.f32 %v2415_v58, %v2413_v57 }
 0x3a3   : > { %v1170_v12 = vmul.f32 %v2748_v8, %v2417_v10  ;;  %v2419_v13 = vpop.eup %2418 }
 0x3a5   : > { %v1172_v8 = vadd.f32 %v1171_v11, %v1170_v12  }
 0x3a7   : > { %2420 = vtanh.f32 %v1172_v8  ;;  %v2438_v8 = vld [vmem:[#allocation20 + $0x40] ss:$16 sps:$4 sm:$0xff] (%p856_p7)  }
 0x3a8   :  { %1408 = vmatpush1.bf16.msra.mxu0 (%p856_p7), %v2438_v8 }
 0x3a9   :  { %1409 = vmatprep.subr.bf16.mxu0 (%p856_p7), %v2440_v25 }
 0x3ac   :  { %1410 = vmatpush1.bf16.msra.mxu0 (%p856_p7), %v2444_v27 }
 0x3ad   :  { %1411 = vmatprep.subr.bf16.mxu0 (%p856_p7), %v2446_v29 }
 0x3ae   :  { %858 = sbr.rel (!%p856_p7) target bundleno = 656 (0x290), region = 118 }
 0x3b0   :  { %1412 = vmatpush1.bf16.msra.mxu0 (%p856_p7), %v2450_v31 }
 0x3b1   : > { %v2421_v14 = vpop.eup %2420  ;;  %1413 = vmatprep.subr.bf16.mxu0 (%p856_p7), %v2452_v33 }
 0x3b2   : > { %v1174_v9 = vmul.f32 %v2421_v14, %v2419_v13  }
 0x3b4   : > { %1176 = vst [vmem:[%s1175_s3] sm:$0xff] %v1174_v9  ;;  %1414 = vmatpush1.bf16.msra.mxu0 (%p856_p7), %v2456_v35 }
 0x3b5   :  { %1415 = vmatprep.subr.bf16.mxu0 %v2458_v37 }
 0x3b8   :  { %1416 = vmatpush1.bf16.msra.mxu0 %v2462_v39 }
 0x3b9   :  { %1417 = vmatprep.subr.bf16.mxu0 %v2464_v41 }
 0x3bb   :  { %v1177_v45 = vld [vmem:[#allocation10] sm:$0xff]  ;;  %v1178_v46 = vld [vmem:[#allocation10 + $0x8] sm:$0xff]  ;;  %v1179_v48 = vld [vmem:[#allocation10 + $0x10] sm:$0xff] }
 0x3bc   :  { %v1185_v47 = vpack.c.bf16 %v1178_v46, %v1177_v45  ;;  %1418 = vmatpush1.bf16.msra.mxu0 %v2468_v43  ;;  %v1180_v49 = vld [vmem:[#allocation10 + $0x18] sm:$0xff]  ;;  %v1181_v60 = vld [vmem:[#allocation10 + $0x20] sm:$0xff]  ;;  %v1182_v61 = vld [vmem:[#allocation10 + $0x28] sm:$0xff] }
 0x3bd   :  { %v1186_v53 = vpack.c.bf16 %v1180_v49, %v1179_v48  ;;  %v1187_v62 = vpack.c.bf16 %v1182_v61, %v1181_v60  ;;  %v1183_v63 = vld [vmem:[#allocation10 + $0x30] sm:$0xff]  ;;  %v1184_v1 = vld [vmem:[#allocation10 + $0x38] sm:$0xff] }
 0x3be   :  { %1509 = vmatmul.mubr.bf16.vlgmr.msra.gmra.mrb[0].mxu1 %v1185_v47  ;;  %v1188_v2 = vpack.c.bf16 %v1184_v1, %v1183_v63 }
 0x3bf   :  { %1436 = vmatmul.mubr.bf16.vlgmr.msra.gmra.mrb[0].mxu0 %v1185_v47  ;;  %1518 = vmatprep.mubr.bf16.mxu1 %v2781_v7 }
 0x3c0   :  { %1445 = vmatprep.mubr.bf16.mxu0 %v2781_v7 }
 0x3c6   :  { %1519 = vmatmul.mubr.bf16.gmra.mrb[4].mxu1 %v1186_v53 }
 0x3c7   :  { %1446 = vmatmul.mubr.bf16.gmra.mrb[4].mxu0 %v1186_v53  ;;  %1528 = vmatprep.mubr.bf16.mxu1 %v2781_v7 }
 0x3c8   :  { %1455 = vmatprep.mubr.bf16.mxu0 %v2781_v7 }
 0x3ce   :  { %1529 = vmatmul.mubr.bf16.gmra.mrb[8].mxu1 %v1187_v62 }
 0x3cf   :  { %1456 = vmatmul.mubr.bf16.gmra.mrb[8].mxu0 %v1187_v62  ;;  %1538 = vmatprep.mubr.bf16.mxu1 %v2781_v7 }
 0x3d0   :  { %1465 = vmatprep.mubr.bf16.mxu0 %v2781_v7  ;;  %v3062_v7 = vrot.slane %v1221_v3, %v502_v54 }
 0x3d6   :  { %1539 = vmatmul.mubr.bf16.gmra.mrb[12].mxu1 %v1188_v2 }
 0x3d7   :  { %1466 = vmatmul.mubr.bf16.gmra.mrb[12].mxu0 %v1188_v2 }
 0x491   :  { %v1510_v56 = vpop.f32.mrb[0].mxu1 }
 0x492   :  { %v1437_v9 = vpop.f32.mrb[0].mxu0  ;;  %v1511_v58 = vadd.f32 %v1510_v56, %v3058_v5  ;;  %v1512_v59 = vpop.f32.mrb[1].mxu1 }
 0x493   :  { %v1438_v57 = vadd.f32 %v1437_v9, %v3054_v4  ;;  %v1439_v51 = vpop.f32.mrb[1].mxu0  ;;  %v1513_v52 = vadd.f32 %v1512_v59, %v3066_v6  ;;  %v1514_v12 = vpop.f32.mrb[2].mxu1  ;;  %v3102_v59 = vmov 0.0  }
 0x494   :  { %v1440_v10 = vadd.f32 %v1439_v51, %v3062_v7  ;;  %v1441_v11 = vpop.f32.mrb[2].mxu0  ;;  %1551 = vst [vmem:[#allocation11 + $0x10] sm:$0xff] %v1511_v58  ;;  %v1515_v54 = vadd.f32 %v1514_v12, %v3058_v5  ;;  %v1516_v13 = vpop.f32.mrb[3].mxu1  ;;  %v3100_v51 = vmov 0.0  }
 0x495   :  { %1549 = vst [vmem:[#allocation11] sm:$0xff] %v1438_v57  ;;  %v1442_v50 = vadd.f32 %v1441_v11, %v3054_v4  ;;  %v1443_v55 = vpop.f32.mrb[3].mxu0  ;;  %1552 = vst [vmem:[#allocation11 + $0x18] sm:$0xff] %v1513_v52  ;;  %v1517_v0 = vadd.f32 %v1516_v13, %v3066_v6 }
 0x496   :  { %1550 = vst [vmem:[#allocation11 + $0x8] sm:$0xff] %v1440_v10  ;;  %v1444_v14 = vadd.f32 %v1443_v55, %v3062_v7  ;;  %1555 = vst [vmem:[#allocation11 + $0x30] sm:$0xff] %v1515_v54 }
 0x497   :  { %1553 = vst [vmem:[#allocation11 + $0x20] sm:$0xff] %v1442_v50  ;;  %1556 = vst [vmem:[#allocation11 + $0x38] sm:$0xff] %v1517_v0 }
 0x498   :  { %1554 = vst [vmem:[#allocation11 + $0x28] sm:$0xff] %v1444_v14 }
 0x499   :  { %v1520_v16 = vpop.f32.mrb[4].mxu1 }
 0x49a   :  { %v1447_v15 = vpop.f32.mrb[4].mxu0  ;;  %v1521_v18 = vadd.f32 %v1520_v16, %v3058_v5  ;;  %v1522_v20 = vpop.f32.mrb[5].mxu1 }
 0x49b   :  { %v1448_v17 = vadd.f32 %v1447_v15, %v3054_v4  ;;  %v1449_v19 = vpop.f32.mrb[5].mxu0  ;;  %v1523_v22 = vadd.f32 %v1522_v20, %v3066_v6  ;;  %v1524_v8 = vpop.f32.mrb[6].mxu1 }
 0x49c   :  { %v1450_v21 = vadd.f32 %v1449_v19, %v3062_v7  ;;  %v1451_v23 = vpop.f32.mrb[6].mxu0  ;;  %1559 = vst [vmem:[#allocation11 + $0x50] sm:$0xff] %v1521_v18  ;;  %v1525_v25 = vadd.f32 %v1524_v8, %v3058_v5  ;;  %v1526_v27 = vpop.f32.mrb[7].mxu1 }
 0x49d   :  { %1557 = vst [vmem:[#allocation11 + $0x40] sm:$0xff] %v1448_v17  ;;  %v1452_v24 = vadd.f32 %v1451_v23, %v3054_v4  ;;  %v1453_v26 = vpop.f32.mrb[7].mxu0  ;;  %1560 = vst [vmem:[#allocation11 + $0x58] sm:$0xff] %v1523_v22  ;;  %v1527_v29 = vadd.f32 %v1526_v27, %v3066_v6 }
 0x49e   :  { %1558 = vst [vmem:[#allocation11 + $0x48] sm:$0xff] %v1450_v21  ;;  %v1454_v28 = vadd.f32 %v1453_v26, %v3062_v7  ;;  %1563 = vst [vmem:[#allocation11 + $0x70] sm:$0xff] %v1525_v25 }
 0x49f   :  { %1561 = vst [vmem:[#allocation11 + $0x60] sm:$0xff] %v1452_v24  ;;  %1564 = vst [vmem:[#allocation11 + $0x78] sm:$0xff] %v1527_v29 }
 0x4a0   :  { %1562 = vst [vmem:[#allocation11 + $0x68] sm:$0xff] %v1454_v28 }
 0x4a1   :  { %v1530_v31 = vpop.f32.mrb[8].mxu1 }
 0x4a2   :  { %v1457_v30 = vpop.f32.mrb[8].mxu0  ;;  %v1531_v33 = vadd.f32 %v1530_v31, %v3058_v5  ;;  %v1532_v35 = vpop.f32.mrb[9].mxu1 }
 0x4a3   :  { %v1458_v32 = vadd.f32 %v1457_v30, %v3054_v4  ;;  %v1459_v34 = vpop.f32.mrb[9].mxu0  ;;  %v1533_v37 = vadd.f32 %v1532_v35, %v3066_v6  ;;  %v1534_v39 = vpop.f32.mrb[10].mxu1 }
 0x4a4   :  { %v1460_v36 = vadd.f32 %v1459_v34, %v3062_v7  ;;  %v1461_v38 = vpop.f32.mrb[10].mxu0  ;;  %1567 = vst [vmem:[#allocation11 + $0x90] sm:$0xff] %v1531_v33  ;;  %v1535_v41 = vadd.f32 %v1534_v39, %v3058_v5  ;;  %v1536_v43 = vpop.f32.mrb[11].mxu1 }
 0x4a5   :  { %1565 = vst [vmem:[#allocation11 + $0x80] sm:$0xff] %v1458_v32  ;;  %v1462_v40 = vadd.f32 %v1461_v38, %v3054_v4  ;;  %v1463_v42 = vpop.f32.mrb[11].mxu0  ;;  %1568 = vst [vmem:[#allocation11 + $0x98] sm:$0xff] %v1533_v37  ;;  %v1537_v45 = vadd.f32 %v1536_v43, %v3066_v6 }
 0x4a6   :  { %1566 = vst [vmem:[#allocation11 + $0x88] sm:$0xff] %v1460_v36  ;;  %v1464_v44 = vadd.f32 %v1463_v42, %v3062_v7  ;;  %1571 = vst [vmem:[#allocation11 + $0xb0] sm:$0xff] %v1535_v41 }
 0x4a7   :  { %1569 = vst [vmem:[#allocation11 + $0xa0] sm:$0xff] %v1462_v40  ;;  %1572 = vst [vmem:[#allocation11 + $0xb8] sm:$0xff] %v1537_v45 }
 0x4a8   :  { %1570 = vst [vmem:[#allocation11 + $0xa8] sm:$0xff] %v1464_v44 }
 0x4a9   :  { %v1540_v47 = vpop.f32.mrb[12].mxu1 }
 0x4aa   :  { %v1467_v46 = vpop.f32.mrb[12].mxu0  ;;  %v1541_v49 = vadd.f32 %v1540_v47, %v3058_v5  ;;  %v1542_v60 = vpop.f32.mrb[13].mxu1 }
 0x4ab   :  { %v1468_v48 = vadd.f32 %v1467_v46, %v3054_v4  ;;  %v1469_v53 = vpop.f32.mrb[13].mxu0  ;;  %v1543_v62 = vadd.f32 %v1542_v60, %v3066_v6  ;;  %v1544_v1 = vpop.f32.mrb[14].mxu1 }
 0x4ac   :  { %v1470_v61 = vadd.f32 %v1469_v53, %v3062_v7  ;;  %v1471_v63 = vpop.f32.mrb[14].mxu0  ;;  %1575 = vst [vmem:[#allocation11 + $0xd0] sm:$0xff] %v1541_v49  ;;  %v1545_v3 = vadd.f32 %v1544_v1, %v3058_v5  ;;  %v1546_v56 = vpop.f32.mrb[15].mxu1 }
 0x4ad   :  { %1573 = vst [vmem:[#allocation11 + $0xc0] sm:$0xff] %v1468_v48  ;;  %v1472_v2 = vadd.f32 %v1471_v63, %v3054_v4  ;;  %v1473_v9 = vpop.f32.mrb[15].mxu0  ;;  %1576 = vst [vmem:[#allocation11 + $0xd8] sm:$0xff] %v1543_v62  ;;  %v1547_v58 = vadd.f32 %v1546_v56, %v3066_v6 }
 0x4ae   :  { %1574 = vst [vmem:[#allocation11 + $0xc8] sm:$0xff] %v1470_v61  ;;  %v1474_v57 = vadd.f32 %v1473_v9, %v3062_v7  ;;  %1579 = vst [vmem:[#allocation11 + $0xf0] sm:$0xff] %v1545_v3 }
 0x4af   :  { %1577 = vst [vmem:[#allocation11 + $0xe0] sm:$0xff] %v1472_v2  ;;  %1580 = vst [vmem:[#allocation11 + $0xf8] sm:$0xff] %v1547_v58 }
 0x4b0   :  { %1578 = vst [vmem:[#allocation11 + $0xe8] sm:$0xff] %v1474_v57 }
 0x4b1 LB: > { %v2470_v4 = vld [vmem:[#allocation21 + $0x4] ss:$16 sps:$4 sm:$0xff]   ;;  %v2472_v5 = vld [vmem:[#allocation21] ss:$16 sps:$4 sm:$0xff]   ;;  %v2783_v7 = vmov 0   ;;  %v1599_v32 = vpack.c.bf16 %v2764_v59, %v2764_v59  ;;  %s2115_s2 = sshll.u32 %s2768_s7, 3  ;;  %s2768_s7 = sphi %s3104_s7, %s1586_s7   ;;  %v2764_v59 = vphi %v3102_v59, %v1901_v59   ;;  %v2760_v51 = vphi %v3100_v51, %v1899_v51  }
 0x4b2   : > { %1824 = vmatprep.mubr.bf16.mxu0 %v2783_v7  ;;  %1865 = vmatprep.mubr.bf16.mxu1 %v2783_v7  ;;  %v2473_v6 = vld [vmem:[#allocation21 + $0x24] ss:$16 sps:$4 sm:$0xff]   ;;  %v2475_v10 = vld [vmem:[#allocation21 + $0x20] ss:$16 sps:$4 sm:$0xff]   ;;  %v2481_v11 = vld [vmem:[#allocation21 + $0xc] ss:$16 sps:$4 sm:$0xff]  }
 0x4b3   : > { %1792 = vmatprep.subr.bf16.mxu0 %v2470_v4  ;;  %v2476_v52 = vld [vmem:[#allocation21 + $0x44] ss:$16 sps:$4 sm:$0xff]   ;;  %v2484_v12 = vld [vmem:[#allocation21 + $0x8] ss:$16 sps:$4 sm:$0xff]   ;;  %v2478_v50 = vld [vmem:[#allocation21 + $0x40] ss:$16 sps:$4 sm:$0xff]   ;;  %1833 = vmatprep.subr.bf16.mxu1 %v2481_v11 }
 0x4b4   : > { %1793 = vmatpush1.bf16.msra.mxu0 %v2472_v5  ;;  %v2479_v54 = vld [vmem:[#allocation21 + $0x64] ss:$16 sps:$4 sm:$0xff]   ;;  %1834 = vmatpush1.bf16.msra.mxu1 %v2484_v12  ;;  %v2487_v55 = vld [vmem:[#allocation21 + $0x2c] ss:$16 sps:$4 sm:$0xff]   ;;  %v2490_v13 = vld [vmem:[#allocation21 + $0x28] ss:$16 sps:$4 sm:$0xff]  }
 0x4b5   : > { %1794 = vmatprep.subr.bf16.mxu0 %v2473_v6  ;;  %1835 = vmatprep.subr.bf16.mxu1 %v2487_v55  ;;  %v2483_v14 = vld [vmem:[#allocation21 + $0x60] ss:$16 sps:$4 sm:$0xff]   ;;  %v2485_v0 = vld [vmem:[#allocation21 + $0x84] ss:$16 sps:$4 sm:$0xff]   ;;  %v2493_v15 = vld [vmem:[#allocation21 + $0x4c] ss:$16 sps:$4 sm:$0xff]  }
 0x4b6   : > { %v2496_v16 = vld [vmem:[#allocation21 + $0x48] ss:$16 sps:$4 sm:$0xff]   ;;  %v2499_v17 = vld [vmem:[#allocation21 + $0x6c] ss:$16 sps:$4 sm:$0xff]   ;;  %v2489_v18 = vld [vmem:[#allocation21 + $0x80] ss:$16 sps:$4 sm:$0xff]  }
 0x4b7   : > { %v2491_v19 = vld [vmem:[#allocation21 + $0xa4] ss:$16 sps:$4 sm:$0xff]   ;;  %v2502_v20 = vld [vmem:[#allocation21 + $0x68] ss:$16 sps:$4 sm:$0xff]   ;;  %v2505_v21 = vld [vmem:[#allocation21 + $0x8c] ss:$16 sps:$4 sm:$0xff]  }
 0x4b8   : > { %1795 = vmatpush1.bf16.msra.mxu0 %v2475_v10  ;;  %1836 = vmatpush1.bf16.msra.mxu1 %v2490_v13  ;;  %v2495_v22 = vld [vmem:[#allocation21 + $0xa0] ss:$16 sps:$4 sm:$0xff]   ;;  %v2497_v23 = vld [vmem:[#allocation21 + $0xc4] ss:$16 sps:$4 sm:$0xff]   ;;  %v2508_v8 = vld [vmem:[#allocation21 + $0x88] ss:$16 sps:$4 sm:$0xff]  }
 0x4b9   : > { %1796 = vmatprep.subr.bf16.mxu0 %v2476_v52  ;;  %1837 = vmatprep.subr.bf16.mxu1 %v2493_v15  ;;  %v2509_v24 = vld [vmem:[#allocation21 + $0xac] ss:$16 sps:$4 sm:$0xff]   ;;  %v2501_v25 = vld [vmem:[#allocation21 + $0xc0] ss:$16 sps:$4 sm:$0xff]   ;;  %v2503_v26 = vld [vmem:[#allocation21 + $0xe4] ss:$16 sps:$4 sm:$0xff]  }
 0x4ba   : > { %v2511_v27 = vld [vmem:[#allocation21 + $0xa8] ss:$16 sps:$4 sm:$0xff]   ;;  %v2512_v28 = vld [vmem:[#allocation21 + $0xcc] ss:$16 sps:$4 sm:$0xff]   ;;  %v2507_v29 = vld [vmem:[#allocation21 + $0xe0] ss:$16 sps:$4 sm:$0xff]  }
 0x4bb   : > { %v2514_v30 = vld [vmem:[#allocation21 + $0xc8] ss:$16 sps:$4 sm:$0xff]   ;;  %v2515_v31 = vld [vmem:[#allocation21 + $0xec] ss:$16 sps:$4 sm:$0xff]   ;;  %s1590_s23 = sshra.s32 %s2115_s2, 3  ;;  %s1902_s26 = scalar_lea.vmem [#allocation23], %s2115_s2 }
 0x4bc   : > { %1797 = vmatpush1.bf16.msra.mxu0 %v2478_v50  ;;  %1838 = vmatpush1.bf16.msra.mxu1 %v2496_v16  ;;  %v2517_v33 = vld [vmem:[#allocation21 + $0xe8] ss:$16 sps:$4 sm:$0xff]   ;;  %s2155_s24 = sshll.u32 %s1590_s23, 5  ;;  %s1586_s7 = sadd.s32 1, %s2768_s7  }
 0x4bd   : > { %1798 = vmatprep.subr.bf16.mxu0 %v2479_v54  ;;  %1839 = vmatprep.subr.bf16.mxu1 %v2499_v17  ;;  %s1594_s25 = scalar_lea.vmem [#allocation11], %s2155_s24  ;;  %p1583_p8 = scmp.ge.s32.totalorder %s1586_s7, 8  }
 0x4be   : > { %v1595_v34 = vld [vmem:[%s1594_s25] sm:$0xff]  ;;  %v1596_v35 = vld [vmem:[%s1594_s25 + $0x8] sm:$0xff]  ;;  %v1598_v44 = vld [vmem:[%s1594_s25 + $0x18] sm:$0xff]  ;;  %s2784_s29 = smov (%p1583_p8), [#allocation23]  }
 0x4bf   : > { %v1597_v53 = vld [vmem:[%s1594_s25 + $0x10] sm:$0xff]  ;;  %s1915_s30 = sshll.u32 (%p1583_p8), %s2784_s29, 4  ;;  %s1916_s30 = int_to_ptr.vmem [resolvable:$true] %s1915_s30 }
 0x4c0   : > { %1799 = vmatpush1.bf16.msra.mxu0 %v2483_v14  ;;  %1840 = vmatpush1.bf16.msra.mxu1 %v2502_v20  ;;  %s2666_s1 = scalar_lea.vmem (%p1583_p8), %s1916_s30, 1024  ;;  %p2671_p10 = scmp.lt.s32.totalorder (%p1583_p8), %s1916_s30, %s1916_s30 }
 0x4c1   : > { %1800 = vmatprep.subr.bf16.mxu0 %v2485_v0  ;;  %1841 = vmatprep.subr.bf16.mxu1 %v2505_v21  ;;  %p2667_p9 = scmp.ne.s32.totalorder (%p1583_p8), %s1916_s30, %s2666_s1  ;;  %p2672_p11 = scmp.lt.s32.totalorder (%p1583_p8), %s2666_s1, %s2666_s1 }
 0x4c3   :  { %p2673_p12 = por (%p1583_p8), %p2672_p11, %p2671_p10 }
 0x4c4   : > { %1801 = vmatpush1.bf16.msra.mxu0 %v2489_v18  ;;  %1842 = vmatpush1.bf16.msra.mxu1 %v2508_v8 }
 0x4c5   : > { %1802 = vmatprep.subr.bf16.mxu0 %v2491_v19  ;;  %1843 = vmatprep.subr.bf16.mxu1 %v2509_v24  ;;  %p2674_p13 = pnand (%p1583_p8), %p2673_p12, %p2667_p9 }
 0x4c8   : > { %1803 = vmatpush1.bf16.msra.mxu0 %v2495_v22  ;;  %1844 = vmatpush1.bf16.msra.mxu1 %v2511_v27 }
 0x4c9   : > { %1804 = vmatprep.subr.bf16.mxu0 %v2497_v23  ;;  %1845 = vmatprep.subr.bf16.mxu1 %v2512_v28 }
 0x4cc   : > { %1805 = vmatpush1.bf16.msra.mxu0 %v2501_v25  ;;  %1846 = vmatpush1.bf16.msra.mxu1 %v2514_v30 }
 0x4cd   : > { %1806 = vmatprep.subr.bf16.mxu0 %v2503_v26  ;;  %1847 = vmatprep.subr.bf16.mxu1 %v2515_v31 }
 0x4d0   : > { %1807 = vmatpush1.bf16.msra.mxu0 %v2507_v29  ;;  %1848 = vmatpush1.bf16.msra.mxu1 %v2517_v33 }
 0x4d3   : > { %1825 = vmatmul.mubr.bf16.vlgmr.msra.gmra.mrb[0].mxu0 %v1599_v32  ;;  %1866 = vmatmul.mubr.bf16.vlgmr.msra.gmra.mrb[0].mxu1 %v1599_v32 }
 0x5a6   : > { %v1826_v36 = vpop.f32.mrb[0].mxu0  ;;  %v1867_v45 = vpop.f32.mrb[0].mxu1 }
 0x5a7   : > { %v1874_v37 = vadd.f32 %v1826_v36, %v1595_v34  ;;  %v1828_v38 = vpop.f32.mrb[1].mxu0  ;;  %v1869_v46 = vpop.f32.mrb[1].mxu1  ;;  %v1876_v61 = vadd.f32 %v1867_v45, %v1597_v53 }
 0x5a8   : > { %v1875_v39 = vadd.f32 %v1828_v38, %v1596_v35  ;;  %v1830_v40 = vpop.f32.mrb[2].mxu0  ;;  %v1877_v47 = vadd.f32 %v1869_v46, %v1598_v44  ;;  %v1871_v48 = vpop.f32.mrb[2].mxu1 }
 0x5a9   : > { %v2150_v41 = vmul.f32 -1.442695, %v1874_v37  ;;  %v1831_v42 = vpop.f32.mrb[3].mxu0  ;;  %v1872_v49 = vpop.f32.mrb[3].mxu1 }
 0x5aa   : > { %v2151_v43 = vmul.f32 -1.442695, %v1875_v39  ;;  %v2152_v60 = vmul.f32 -1.442695, %v1877_v47 }
 0x5ab   : > { %2518 = vpow2.f32 %v2150_v41 }
 0x5ac   : > { %2520 = vpow2.f32 %v2151_v43 }
 0x5ad   : > { %2522 = vpow2.f32 %v2152_v60 }
 0x5ae   : > { %2524 = vtanh.f32 %v1876_v61 }
 0x5b5   : > { %v2519_v62 = vpop.eup %2518 }
 0x5b6   : > { %v2521_v63 = vpop.eup %2520  ;;  %v1881_v1 = vadd.f32 1.0, %v2519_v62 }
 0x5b7   : > { %v1887_v2 = vadd.f32 1.0, %v2521_v63  ;;  %v2523_v3 = vpop.eup %2522 }
 0x5b8   : > { %2526 = vrcp.f32 %v1881_v1  ;;  %v2525_v9 = vpop.eup %2524  ;;  %v1894_v57 = vadd.f32 1.0, %v2523_v3 }
 0x5b9   : > { %2528 = vrcp.f32 %v1887_v2 }
 0x5ba   : > { %2530 = vrcp.f32 %v1894_v57 }
 0x5c2   : > { %v2527_v56 = vpop.eup %2526 }
 0x5c3   : > { %v2529_v58 = vpop.eup %2528  ;;  %v1898_v59 = vmul.f32 %v2527_v56, %v2525_v9 }
 0x5c4   : > { %v1897_v4 = vmul.f32 %v2760_v51, %v2529_v58  ;;  %v2531_v5 = vpop.eup %2530 }
 0x5c6   : > { %v1899_v51 = vadd.f32 %v1898_v59, %v1897_v4  }
 0x5c8   : > { %2532 = vtanh.f32 %v1899_v51 }
 0x5cf   :  { %1585 = sbr.rel (!%p1583_p8) target bundleno = 1201 (0x4b1), region = 129 }
 0x5d2   : > { %v2533_v7 = vpop.eup %2532 }
 0x5d3   : > { %v1901_v59 = vmul.f32 %v2533_v7, %v2531_v5  }
 0x5d5   : > { %1903 = vst [vmem:[%s1902_s26] sm:$0xff] %v1901_v59 }
 0x5d6   :  { %2677 = shalt.err (!%p2674_p13)
}
 0x5d7   :  { %s2678_s10 = scalar_lea.hbm %s3150_s8, 1024 }
 0x5d8   :  { %p2679_p0 = scmp.ne.s32.totalorder %s3150_s8, %s2678_s10  ;;  %p2682_p1 = scmp.lt.u32.totalorder %s2678_s10, %s3150_s8 }
 0x5da   :  { %p2684_p2 = pnand %p2682_p1, %p2679_p0 }
 0x5dc   :  { %2687 = shalt.err (!%p2684_p2)
}
 0x5dd   :  { %s2785_s6 = smov 128   ;;  %s2786_s15 = smov 8  }
 0x5de   :  { %1921 = dma.vmem_to_hbm [thread:$0]  %s1916_s30, 1024, %s3150_s8, [#allocation14], %s2785_s6, %s2785_s6, %s2786_s15  }
 0x5df   :  { %2732 = dma.done.wait [#allocation14], 1024  }
 0x5e0   :  { %2733 = vsyncadd [#allocation14], 4294966272 }
 0x5e1   :  { %1925 = vsyncpa [#allocation13], 1 }
 0x5e2   :  { %1926 = vsyncpa [#allocation16], 1 }
 0x5e3   :  { %1927 = vsyncpa [#allocation19], 1 }
 0x5e4   :  { %1928 = vsyncpa [#allocation22], 1 }
 0x5e5   :  { %1929 = vsyncpa [#allocation14], 1 }

</bundles_post_ra>
